<compile_context>
chip_gen: v6e
topology: v6e:2x2x1
jax: 0.10.0
libtpu: 0.0.40
codegen_flags: <defaults>
</compile_context>

<pallas_src>
import functools

import jax
import jax.numpy as jnp
from jax.experimental import pallas as pl
from jax.experimental.pallas import tpu as pltpu


# ---------------------------------------------------------------------------
# helpers
# ---------------------------------------------------------------------------
def _round_up(x, m):
    return ((x + m - 1) // m) * m


def _pick_tile(dim, candidates):
    for c in candidates:
        if dim % c == 0:
            return c
    return dim


def _batch_block(B, max_bb=4):
    """Batch block size: >=2 grid steps when B >= 2 (v7x megacore) with small blocks."""
    bb = min(max_bb, max(1, B // 2))
    return bb, _round_up(B, bb)


def _vmem_limit(est_bytes):
    """Real footprint + headroom; never request the whole per-core VMEM (v7x: 64 MiB)."""
    return int(min(40 * 1024 * 1024, max(8 * 1024 * 1024, 2 * est_bytes)))


# ---------------------------------------------------------------------------
# Packed dense layer: weight pre-padded to (8,128) tiles and pre-cast to bf16
# once at parameter setup; din/dout live in pytree aux data so they remain
# static Python ints under jit.
# ---------------------------------------------------------------------------
@jax.tree_util.register_pytree_node_class
class Dense:
    def __init__(self, w, b, din, dout):
        self.w, self.b, self.din, self.dout = w, b, din, dout

    def tree_flatten(self):
        return (self.w, self.b), (self.din, self.dout)

    @classmethod
    def tree_unflatten(cls, aux, children):
        return cls(children[0], children[1], aux[0], aux[1])


def pack_dense(w, b):
    din, dout = w.shape
    kp, np_ = _round_up(din, 128), _round_up(dout, 128)
    wp = jnp.pad(w, ((0, kp - din), (0, np_ - dout))).astype(jnp.bfloat16)
    bp = jnp.pad(b, ((0, 0), (0, np_ - dout))).astype(jnp.float32)
    return Dense(wp, bp, din, dout)


# ---------------------------------------------------------------------------
# Kernel 1: tiled fused dense layer: y = relu?((x * row_scale?) @ W + b)
# ---------------------------------------------------------------------------
def _linear_kernel(*refs, relu, has_scale):
    if has_scale:
        x_ref, s_ref, w_ref, b_ref, o_ref, acc_ref = refs
    else:
        x_ref, w_ref, b_ref, o_ref, acc_ref = refs
        s_ref = None
    k = pl.program_id(2)

    @pl.when(k == 0)
    def _init():
        acc_ref[...] = jnp.zeros_like(acc_ref)

    acc_ref[...] += jnp.dot(x_ref[...], w_ref[...],
                            preferred_element_type=jnp.float32)

    @pl.when(k == pl.num_programs(2) - 1)
    def _finalize():
        y = acc_ref[...]
        if has_scale:
            y = y * s_ref[...]        # per-row scale (folded L2 normalization)
        y = y + b_ref[...]
        if relu:
            y = jnp.maximum(y, 0.0)
        o_ref[...] = y.astype(o_ref.dtype)


def pallas_linear(x, layer, relu, *, out_dtype=jnp.float32, row_scale=None):
    """y = relu?((x * row_scale?) @ W + b) with pre-padded, pre-cast bf16 weights."""
    R, Din = x.shape
    assert Din == layer.din
    wp, bp = layer.w, layer.b
    Kp, Np = wp.shape
    Dout = layer.dout

    Rp = _round_up(R, 8)
    tm = _pick_tile(Rp, (512, 256, 128, 64, 32, 16, 8))
    # Weight-resident (single k / n step) whenever the weight comfortably fits
    # VMEM: maximizes per-output-tile arithmetic intensity (MXU-bound regime).
    if Kp * Np * 2 <= 4 * 1024 * 1024:
        tk, tn = Kp, Np
    else:
        tk = _pick_tile(Kp, (1024, 512, 256, 128))
        tn = _pick_tile(Np, (512, 256, 128))

    xp = x
    if Rp != R or Kp != Din:
        xp = jnp.pad(x, ((0, Rp - R), (0, Kp - Din)))
    xp = xp.astype(jnp.bfloat16)

    has_scale = row_scale is not None
    ins = [xp]
    in_specs = [pl.BlockSpec((tm, tk), lambda i, j, k: (i, k))]
    if has_scale:
        sp = row_scale.reshape(R, 1).astype(jnp.float32)
        if Rp != R:
            sp = jnp.pad(sp, ((0, Rp - R), (0, 0)))
        ins.append(sp)
        in_specs.append(pl.BlockSpec((tm, 1), lambda i, j, k: (i, 0)))
    ins += [wp, bp]
    in_specs += [pl.BlockSpec((tk, tn), lambda i, j, k: (k, j)),
                 pl.BlockSpec((1, tn), lambda i, j, k: (0, j))]

    out_isz = jnp.dtype(out_dtype).itemsize
    est = (2 * tm * tk * 2 + 2 * tk * tn * 2 + 2 * tn * 4
           + 2 * tm * tn * out_isz + tm * tn * 4 + (2 * tm * 4 if has_scale else 0))
    cost = pl.CostEstimate(
        flops=2 * Rp * Kp * Np,
        transcendentals=0,
        bytes_accessed=Rp * Kp * 2 + Kp * Np * 2 + Np * 4 + Rp * Np * out_isz)

    grid = (Rp // tm, Np // tn, Kp // tk)
    out = pl.pallas_call(
        functools.partial(_linear_kernel, relu=relu, has_scale=has_scale),
        out_shape=jax.ShapeDtypeStruct((Rp, Np), out_dtype),
        grid_spec=pltpu.PrefetchScalarGridSpec(
            num_scalar_prefetch=0,
            grid=grid,
            in_specs=in_specs,
            out_specs=pl.BlockSpec((tm, tn), lambda i, j, k: (i, j)),
            scratch_shapes=[pltpu.VMEM((tm, tn), jnp.float32)]),
        compiler_params=pltpu.CompilerParams(
            dimension_semantics=("parallel", "parallel", "arbitrary"),
            vmem_limit_bytes=_vmem_limit(est)),
        cost_estimate=cost,
    )(*ins)

    if Rp != R or Np != Dout:
        out = out[:R, :Dout]
    return out


# ---------------------------------------------------------------------------
# Kernel 2: BiAttention — one fused MXU contraction over all glimpses:
#   logits[:, :, g*Q+q] = vp @ (qp * w[g]).T + b[g]; mask; per-glimpse softmax
# Outputs: attention [B, N, G*Q] bf16 (lane-dense) and max-over-Q logits [B, G, N].
# ---------------------------------------------------------------------------
def _biatt_kernel(vp_ref, qp_ref, w_ref, b_ref, vm_ref, qm_ref, att_ref, mx_ref,
                  *, G, Q):
    vp = vp_ref[...]                                    # (BB, N, M) bf16
    qp = qp_ref[...].astype(jnp.float32)                # (BB, Q, M) f32 elementwise
    w = w_ref[...]                                      # (G, M)  f32

    # Build qw (BB, G*Q, M): scale the small QxM operand per glimpse in f32,
    # single cast to bf16, then ONE wide matmul (lane dim G*Q) on the MXU.
    qw_parts = []
    for g in range(G):
        qw_parts.append((qp * w[g, :][None, None, :]).astype(jnp.bfloat16))
    qw = jnp.concatenate(qw_parts, axis=1)              # (BB, G*Q, M) bf16

    logits = jnp.einsum('bnm,bkm->bnk', vp, qw,
                        preferred_element_type=jnp.float32)   # (BB, N, G*Q)
    logits = logits + b_ref[...][None]                  # per-glimpse bias

    vm = vm_ref[...][:, 0, :]                           # (BB, N)
    qm = qm_ref[...][:, 0, :]                           # (BB, G*Q)
    valid = (vm[:, :, None] * qm[:, None, :]) > 0.0
    # Large finite negative => NaN-safe softmax; sigmoid(count logits) -> 0.
    logits = jnp.where(valid, logits, -1e30)

    for g in range(G):                                  # per-glimpse normalization
        lg = logits[:, :, g * Q:(g + 1) * Q]            # (BB, N, Q)
        mx_ref[:, g:g + 1, :] = jnp.max(lg, axis=2)[:, None, :]
        m = jnp.max(lg, axis=(1, 2), keepdims=True)
        e = jnp.exp(lg - m)
        s = jnp.sum(e, axis=(1, 2), keepdims=True)      # >= 1 (max term)
        att_ref[:, :, g * Q:(g + 1) * Q] = (e * (1.0 / s)).astype(att_ref.dtype)


def pallas_biattention(v_p, q_p, h_w, h_b, v_mask, q_mask):
    """Returns atten [B, N, G*Q] bf16 (glimpse-minor, lane-dense) and max-logits [B, G, N]."""
    B, N, M = v_p.shape
    Q = q_p.shape[1]
    G = h_w.shape[0]
    GQ = G * Q
    BB, Bp = _batch_block(B)

    b_full = jnp.broadcast_to(h_b.reshape(G, 1), (G, Q)).reshape(1, GQ)
    b_full = b_full.astype(jnp.float32)
    vm3 = v_mask.reshape(B, 1, N).astype(jnp.float32)
    qm3 = jnp.tile(q_mask.astype(jnp.float32), (1, G)).reshape(B, 1, GQ)

    if Bp != B:
        pad = Bp - B
        v_p = jnp.pad(v_p, ((0, pad), (0, 0), (0, 0)))
        q_p = jnp.pad(q_p, ((0, pad), (0, 0), (0, 0)))
        vm3 = jnp.pad(vm3, ((0, pad), (0, 0), (0, 0)))
        qm3 = jnp.pad(qm3, ((0, pad), (0, 0), (0, 0)))

    est = (2 * BB * N * M * 2 + 2 * BB * Q * M * 2 + G * M * 4 + GQ * 4
           + 2 * BB * (N + GQ) * 4
           + 2 * (BB * N * GQ * 2 + BB * G * N * 4)
           + BB * GQ * M * 6 + 4 * BB * N * GQ * 4)

    att, mx = pl.pallas_call(
        functools.partial(_biatt_kernel, G=G, Q=Q),
        out_shape=(jax.ShapeDtypeStruct((Bp, N, GQ), jnp.bfloat16),
                   jax.ShapeDtypeStruct((Bp, G, N), jnp.float32)),
        grid=(Bp // BB,),
        in_specs=[
            pl.BlockSpec((BB, N, M), lambda b: (b, 0, 0)),
            pl.BlockSpec((BB, Q, M), lambda b: (b, 0, 0)),
            pl.BlockSpec((G, M), lambda b: (0, 0)),
            pl.BlockSpec((1, GQ), lambda b: (0, 0)),
            pl.BlockSpec((BB, 1, N), lambda b: (b, 0, 0)),
            pl.BlockSpec((BB, 1, GQ), lambda b: (b, 0, 0)),
        ],
        out_specs=(pl.BlockSpec((BB, N, GQ), lambda b: (b, 0, 0)),
                   pl.BlockSpec((BB, G, N), lambda b: (b, 0, 0))),
        compiler_params=pltpu.CompilerParams(
            dimension_semantics=("parallel",),
            vmem_limit_bytes=_vmem_limit(est)),
    )(v_p, q_p, h_w, b_full, vm3, qm3)

    if Bp != B:
        att, mx = att[:B], mx[:B]
    return att, mx


# ---------------------------------------------------------------------------
# Kernel 3: glimpse contraction + fused lin_atten:
#   h[b, m]  = sum_{n, q} vp[g, b, n, m] * atten[b, n, g*Q + q] * qp[b, q, m]
#   out[b]   = h[b] @ Wa + ba
# ---------------------------------------------------------------------------
def _glimpse_kernel(att_ref, vp_ref, qp_ref, wa_ref, ba_ref, out_ref, *, g, Q):
    a = att_ref[...][:, :, g * Q:(g + 1) * Q]           # (BB, N, Q) bf16
    vp = vp_ref[0]                                      # (BB, N, M) bf16
    qp = qp_ref[...]                                    # (BB, Q, M) bf16
    t = jnp.einsum('bnq,bnm->bqm', a, vp,
                   preferred_element_type=jnp.float32)  # (BB, Q, M)
    h = jnp.sum(t * qp.astype(jnp.float32), axis=1)     # (BB, M)
    ah = jnp.dot(h.astype(jnp.bfloat16), wa_ref[...],   # fused lin_atten (no relu)
                 preferred_element_type=jnp.float32) + ba_ref[...]
    out_ref[...] = ah[:, None, :].astype(out_ref.dtype)


def pallas_glimpse_apply(att, vp_all, qp_g, wa, ba, *, g, Q):
    G, B, N, M = vp_all.shape
    GQ = att.shape[-1]
    BB, Bp = _batch_block(B)
    if Bp != B:
        pad = Bp - B
        att = jnp.pad(att, ((0, pad), (0, 0), (0, 0)))
        vp_all = jnp.pad(vp_all, ((0, 0), (0, pad), (0, 0), (0, 0)))
        qp_g = jnp.pad(qp_g, ((0, pad), (0, 0), (0, 0)))

    est = (2 * BB * N * GQ * 2 + 2 * BB * N * M * 2 + 2 * BB * Q * M * 2
           + M * M * 2 + M * 4 + 2 * BB * M * 4 + 2 * BB * Q * M * 4)

    out = pl.pallas_call(
        functools.partial(_glimpse_kernel, g=g, Q=Q),
        out_shape=jax.ShapeDtypeStruct((Bp, 1, M), jnp.float32),
        grid=(Bp // BB,),
        in_specs=[
            pl.BlockSpec((BB, N, GQ), lambda b: (b, 0, 0)),
            pl.BlockSpec((1, BB, N, M), lambda b: (g, b, 0, 0)),  # glimpse-major, no strided slice
            pl.BlockSpec((BB, Q, M), lambda b: (b, 0, 0)),
            pl.BlockSpec((M, M), lambda b: (0, 0)),
            pl.BlockSpec((1, M), lambda b: (0, 0)),
        ],
        out_specs=pl.BlockSpec((BB, 1, M), lambda b: (b, 0, 0)),
        compiler_params=pltpu.CompilerParams(
            dimension_semantics=("parallel",),
            vmem_limit_bytes=_vmem_limit(est)),
    )(att, vp_all, qp_g, wa, ba)

    out = out.reshape(Bp, M)
    if Bp != B:
        out = out[:B]
    return out


# ---------------------------------------------------------------------------
# Plain-JAX glue
# ---------------------------------------------------------------------------
def simple_counter(boxes, max_logits, objects):
    # TODO(synk): stand-in for the learned Counter module (not provided):
    # soft one-hot of the sigmoid-summed per-object max attention logits.
    del boxes  # the real Counter uses box-IoU dedup; omitted here
    a = jax.nn.sigmoid(max_logits)                                # [B, N]
    c = jnp.clip(jnp.sum(a, axis=-1), 0.0, float(objects))        # [B]
    k = jnp.arange(objects + 1, dtype=jnp.float32)[None, :]
    return jnp.maximum(0.0, 1.0 - jnp.abs(c[:, None] - k))        # [B, objects+1]


def net_forward(params, v, boxes, q_tokens, v_mask, q_mask, q_len):
    del q_len  # only used by pack_padded_sequence in the reference
    B, Vf, N = v.shape
    Qlen = q_tokens.shape[1]

    # --- text processing (TODO(synk): TextProcessor LSTM replaced by emb + tanh(linear)) ---
    q_emb = params["emb"][q_tokens]                               # [B, Q, E]
    E = q_emb.shape[-1]
    q_feat = pallas_linear(q_emb.reshape(B * Qlen, E), params["text"], relu=False)
    q_feat = jnp.tanh(q_feat).reshape(B, Qlen, -1)                # [B, Q, H]
    H = q_feat.shape[-1]

    # --- v_feat_norm folded into the v projections (per-row scale inside the kernel) ---
    inv_norm = 1.0 / (jnp.sqrt(jnp.sum(v * v, axis=1)) + 1e-12)   # [B, N]
    v_rows = jnp.transpose(v, (0, 2, 1)).reshape(B * N, Vf)       # un-normalized rows
    row_scale = inv_norm.reshape(B * N, 1)

    # --- BiAttention ---
    M = params["att_v"].dout
    v_p = pallas_linear(v_rows, params["att_v"], relu=True,
                        out_dtype=jnp.bfloat16, row_scale=row_scale).reshape(B, N, M)
    q_p = pallas_linear(q_feat.reshape(B * Qlen, H), params["att_q"], relu=True,
                        out_dtype=jnp.bfloat16).reshape(B, Qlen, M)
    att, max_logits = pallas_biattention(v_p, q_p, params["h_weight"],
                                         params["h_bias"], v_mask, q_mask)
    # att: [B, N, G*Q] bf16 (lane-dense); max_logits: [B, G, N] f32 (fused max over Q)

    # --- ApplyAttention (sequential glimpses; q is carried) ---
    G = params["h_weight"].shape[0]
    objects = params["glimpses"][0]["wc"].shape[0] - 1

    # lin_v of every glimpse depends only on v -> one fused matmul, glimpse-major layout.
    vp_all = pallas_linear(v_rows, params["lin_v_all"], relu=True,
                           out_dtype=jnp.bfloat16, row_scale=row_scale)
    vp_all = vp_all.reshape(B, N, G, M).transpose(2, 0, 1, 3)     # [G, B, N, M]

    q_cur = q_feat
    for g in range(G):
        gl = params["glimpses"][g]
        qp_g = pallas_linear(q_cur.reshape(B * Qlen, H), gl["lin_q"], relu=True,
                             out_dtype=jnp.bfloat16).reshape(B, Qlen, M)
        atten_h = pallas_glimpse_apply(att, vp_all, qp_g, gl["wa"], gl["ba"],
                                       g=g, Q=Qlen)               # [B, M] (lin_atten fused)
        ce = simple_counter(boxes, max_logits[:, g], objects)     # [B, objects+1]
        # tiny (B-row) count projection stays in XLA (MXU fill / launch overhead)
        count_h = jnp.maximum(ce @ gl["wc"] + gl["bc"], 0.0)      # [B, M]
        q_cur = q_cur + atten_h[:, None, :] + count_h[:, None, :]

    q_cur = q_cur * q_mask[:, :, None]
    new_q = jnp.sum(q_cur, axis=1)                                # [B, M]

    # --- Classifier ---
    x = pallas_linear(new_q, params["cls1"], relu=True)
    answer = pallas_linear(x, params["cls2"], relu=False)
    return answer


# ---------------------------------------------------------------------------
# Deterministic parameter construction (weights pre-padded / pre-cast once)
# ---------------------------------------------------------------------------
def init_params(key, *, vocab, E, H, Vf, G, objects, answers):
    M = H
    C1 = objects + 1
    keys = iter(jax.random.split(key, 16 + 8 * G))

    def nrm(shape, scale=0.05):
        return (scale * jax.random.normal(next(keys), shape)).astype(jnp.float32)

    def dense(din, dout, scale=0.05):
        return pack_dense(nrm((din, dout), scale), nrm((1, dout), scale))

    params = {
        "emb": nrm((vocab, E), 0.1),
        "text": dense(E, H),
        "att_v": dense(Vf, M),
        "att_q": dense(H, M),
        "h_weight": nrm((G, M), 0.1),
        "h_bias": nrm((G, 1), 0.1),
        "cls1": dense(M, 2 * M),
        "cls2": dense(2 * M, answers),
        "glimpses": [],
    }
    wv_list, bv_list = [], []
    for _ in range(G):
        wv_list.append(nrm((Vf, M)))
        bv_list.append(nrm((1, M)))
        params["glimpses"].append({
            "lin_q": dense(H, M),
            "wa": nrm((M, M)).astype(jnp.bfloat16),   # fused into the glimpse kernel
            "ba": nrm((1, M)),
            "wc": nrm((C1, M)),
            "bc": nrm((1, M)),
        })
    params["lin_v_all"] = pack_dense(jnp.concatenate(wv_list, axis=1),
                                     jnp.concatenate(bv_list, axis=1))
    return params


if __name__ == "__main__":
    # Small shapes consistent with the module's forward semantics.
    B, N, Q = 2, 8, 8          # batch, num_obj, max_q_len
    Vf, H = 32, 32             # vision features, num_hid (= mid_features)
    G = 2                      # glimpses
    OBJECTS = 8                # Counter objects -> count embed dim = 9
    ANSWERS = 16               # config.max_answers
    VOCAB, E = 50, 32          # word vocab, embedding dim

    key = jax.random.PRNGKey(0)
    kp, kv, kb, kq = jax.random.split(key, 4)
    params = init_params(kp, vocab=VOCAB, E=E, H=H, Vf=Vf, G=G,
                         objects=OBJECTS, answers=ANSWERS)

    v = jax.random.normal(kv, (B, Vf, N), dtype=jnp.float32)      # [batch, feat, num_obj]
    boxes = jax.random.uniform(kb, (B, 4, N), dtype=jnp.float32)  # [batch, 4, num_obj]
    q_tokens = jax.random.randint(kq, (B, Q), 0, VOCAB)           # [batch, max_q_len]
    q_len = jnp.array([5, 8], dtype=jnp.int32)

    v_mask = jnp.array([[1, 1, 1, 1, 1, 1, 0, 0],
                        [1, 1, 1, 1, 1, 1, 1, 1]], dtype=jnp.float32)
    q_mask = (jnp.arange(Q)[None, :] < q_len[:, None]).astype(jnp.float32)

    fwd = jax.jit(net_forward)
    out = fwd(params, v, boxes, q_tokens, v_mask, q_mask, q_len)
    out = jax.block_until_ready(out)

    assert out.shape == (B, ANSWERS), out.shape
    assert bool(jnp.all(jnp.isfinite(out)))
    print("KERNEL_OK")
</pallas_src>

<mosaic_0001>
module attributes {stable_mosaic.version = 11 : i64} {
  func.func @_linear_kernel(%arg0: i32, %arg1: i32, %arg2: i32, %arg3: memref<16x128xbf16, #tpu.memory_space<vmem>>, %arg4: memref<16x1xf32, #tpu.memory_space<vmem>>, %arg5: memref<128x128xbf16, #tpu.memory_space<vmem>>, %arg6: memref<1x128xf32, #tpu.memory_space<vmem>>, %arg7: memref<16x128xbf16, #tpu.memory_space<vmem>>, %arg8: memref<16x128xf32, #tpu.memory_space<vmem>>) attributes {dimension_semantics = [#tpu.dimension_semantics<parallel>, #tpu.dimension_semantics<parallel>, #tpu.dimension_semantics<arbitrary>], iteration_bounds = array<i64: 1, 1, 1>, scalar_prefetch = 0 : i64, scratch_operands = 1 : i64, tpu.core_type = #tpu.core_type<tc>, window_params = [{transform_indices = @transform_0, window_bounds = array<i64: 16, 128>}, {transform_indices = @transform_1, window_bounds = array<i64: 16, 1>}, {transform_indices = @transform_2, window_bounds = array<i64: 128, 128>}, {transform_indices = @transform_3, window_bounds = array<i64: 1, 128>}, {transform_indices = @transform_4, window_bounds = array<i64: 16, 128>}]} {
    %c0_i32 = arith.constant 0 : i32
    %0 = arith.cmpi eq, %arg2, %c0_i32 : i32
    %1 = arith.extui %0 : i1 to i32
    %c0_i32_0 = arith.constant 0 : i32
    %2 = arith.cmpi ne, %1, %c0_i32_0 : i32
    scf.if %2 {
      %cst_10 = arith.constant 0.000000e+00 : f32
      %12 = vector.broadcast %cst_10 : f32 to vector<16x128xf32>
      %c0_11 = arith.constant 0 : index
      %c0_12 = arith.constant 0 : index
      %13 = vector.load %arg8[%c0_11, %c0_12] : memref<16x128xf32, #tpu.memory_space<vmem>>, vector<16x128xf32>
      tpu.vector_store %arg8[%c0_11, %c0_12], %12 {strides = array<i32>} : memref<16x128xf32, #tpu.memory_space<vmem>>, vector<16x128xf32>,
    } else {
    }
    %c0 = arith.constant 0 : index
    %c0_1 = arith.constant 0 : index
    %3 = vector.load %arg8[%c0, %c0_1] : memref<16x128xf32, #tpu.memory_space<vmem>>, vector<16x128xf32>
    %c0_2 = arith.constant 0 : index
    %c0_3 = arith.constant 0 : index
    %4 = vector.load %arg3[%c0_2, %c0_3] : memref<16x128xbf16, #tpu.memory_space<vmem>>, vector<16x128xbf16>
    %c0_4 = arith.constant 0 : index
    %c0_5 = arith.constant 0 : index
    %5 = vector.load %arg5[%c0_4, %c0_5] : memref<128x128xbf16, #tpu.memory_space<vmem>>, vector<128x128xbf16>
    %cst = arith.constant dense<0.000000e+00> : vector<16x128xf32>
    %6 = tpu.matmul %4, %5, %cst {dimension_numbers = #tpu.dot_dimension_numbers<[1], [0], [0], [1], [0, 0, 1, 1], [], []>} : vector<16x128xbf16>, vector<128x128xbf16>, vector<16x128xf32> -> vector<16x128xf32>
    %7 = arith.addf %3, %6 : vector<16x128xf32>
    %c0_6 = arith.constant 0 : index
    %c0_7 = arith.constant 0 : index
    %8 = vector.load %arg8[%c0_6, %c0_7] : memref<16x128xf32, #tpu.memory_space<vmem>>, vector<16x128xf32>
    tpu.vector_store %arg8[%c0_6, %c0_7], %7 {strides = array<i32>} : memref<16x128xf32, #tpu.memory_space<vmem>>, vector<16x128xf32>,
    %c0_i32_8 = arith.constant 0 : i32
    %9 = arith.cmpi eq, %arg2, %c0_i32_8 : i32
    %10 = arith.extui %9 : i1 to i32
    %c0_i32_9 = arith.constant 0 : i32
    %11 = arith.cmpi ne, %10, %c0_i32_9 : i32
    scf.if %11 {
      %c0_10 = arith.constant 0 : index
      %c0_11 = arith.constant 0 : index
      %12 = vector.load %arg8[%c0_10, %c0_11] : memref<16x128xf32, #tpu.memory_space<vmem>>, vector<16x128xf32>
      %c0_12 = arith.constant 0 : index
      %c0_13 = arith.constant 0 : index
      %13 = vector.load %arg4[%c0_12, %c0_13] : memref<16x1xf32, #tpu.memory_space<vmem>>, vector<16x1xf32>
      %14 = vector.broadcast %13 : vector<16x1xf32> to vector<16x128xf32>
      %15 = arith.mulf %12, %14 : vector<16x128xf32>
      %c0_14 = arith.constant 0 : index
      %c0_15 = arith.constant 0 : index
      %16 = vector.load %arg6[%c0_14, %c0_15] : memref<1x128xf32, #tpu.memory_space<vmem>>, vector<1x128xf32>
      %17 = vector.broadcast %16 : vector<1x128xf32> to vector<16x128xf32>
      %18 = arith.addf %15, %17 : vector<16x128xf32>
      %cst_16 = arith.constant 0.000000e+00 : f32
      %19 = vector.broadcast %cst_16 : f32 to vector<16x128xf32>
      %20 = arith.maximumf %18, %19 : vector<16x128xf32>
      %21 = arith.truncf %20 : vector<16x128xf32> to vector<16x128xbf16>
      %c0_17 = arith.constant 0 : index
      %c0_18 = arith.constant 0 : index
      %22 = vector.load %arg7[%c0_17, %c0_18] : memref<16x128xbf16, #tpu.memory_space<vmem>>, vector<16x128xbf16>
      tpu.vector_store %arg7[%c0_17, %c0_18], %21 {strides = array<i32>} : memref<16x128xbf16, #tpu.memory_space<vmem>>, vector<16x128xbf16>,
    } else {
    }
    return
  }
  func.func @transform_0(%arg0: i32, %arg1: i32, %arg2: i32) -> (i32, i32) {
    %c0_i32 = arith.constant 0 : i32
    return %arg0, %arg2 : i32, i32
  }
  func.func @transform_1(%arg0: i32, %arg1: i32, %arg2: i32) -> (i32, i32) {
    %c0_i32 = arith.constant 0 : i32
    %c0_i32_0 = arith.constant 0 : i32
    return %arg0, %c0_i32 : i32, i32
  }
  func.func @transform_2(%arg0: i32, %arg1: i32, %arg2: i32) -> (i32, i32) {
    %c0_i32 = arith.constant 0 : i32
    return %arg2, %arg1 : i32, i32
  }
  func.func @transform_3(%arg0: i32, %arg1: i32, %arg2: i32) -> (i32, i32) {
    %c0_i32 = arith.constant 0 : i32
    %c0_i32_0 = arith.constant 0 : i32
    return %c0_i32, %arg1 : i32, i32
  }
  func.func @transform_4(%arg0: i32, %arg1: i32, %arg2: i32) -> (i32, i32) {
    %c0_i32 = arith.constant 0 : i32
    return %arg0, %arg1 : i32, i32
  }
}

module attributes {stable_mosaic.version = 11 : i64} {
  func.func @_linear_kernel(%arg0: i32, %arg1: i32, %arg2: i32, %arg3: memref<16x128xbf16, #tpu.memory_space<vmem>>, %arg4: memref<128x128xbf16, #tpu.memory_space<vmem>>, %arg5: memref<1x128xf32, #tpu.memory_space<vmem>>, %arg6: memref<16x128xf32, #tpu.memory_space<vmem>>, %arg7: memref<16x128xf32, #tpu.memory_space<vmem>>) attributes {dimension_semantics = [#tpu.dimension_semantics<parallel>, #tpu.dimension_semantics<parallel>, #tpu.dimension_semantics<arbitrary>], iteration_bounds = array<i64: 1, 1, 1>, scalar_prefetch = 0 : i64, scratch_operands = 1 : i64, tpu.core_type = #tpu.core_type<tc>, window_params = [{transform_indices = @transform_0, window_bounds = array<i64: 16, 128>}, {transform_indices = @transform_1, window_bounds = array<i64: 128, 128>}, {transform_indices = @transform_2, window_bounds = array<i64: 1, 128>}, {transform_indices = @transform_3, window_bounds = array<i64: 16, 128>}]} {
    %c0_i32 = arith.constant 0 : i32
    %0 = arith.cmpi eq, %arg2, %c0_i32 : i32
    %1 = arith.extui %0 : i1 to i32
    %c0_i32_0 = arith.constant 0 : i32
    %2 = arith.cmpi ne, %1, %c0_i32_0 : i32
    scf.if %2 {
      %cst_10 = arith.constant 0.000000e+00 : f32
      %12 = vector.broadcast %cst_10 : f32 to vector<16x128xf32>
      %c0_11 = arith.constant 0 : index
      %c0_12 = arith.constant 0 : index
      %13 = vector.load %arg7[%c0_11, %c0_12] : memref<16x128xf32, #tpu.memory_space<vmem>>, vector<16x128xf32>
      tpu.vector_store %arg7[%c0_11, %c0_12], %12 {strides = array<i32>} : memref<16x128xf32, #tpu.memory_space<vmem>>, vector<16x128xf32>,
    } else {
    }
    %c0 = arith.constant 0 : index
    %c0_1 = arith.constant 0 : index
    %3 = vector.load %arg7[%c0, %c0_1] : memref<16x128xf32, #tpu.memory_space<vmem>>, vector<16x128xf32>
    %c0_2 = arith.constant 0 : index
    %c0_3 = arith.constant 0 : index
    %4 = vector.load %arg3[%c0_2, %c0_3] : memref<16x128xbf16, #tpu.memory_space<vmem>>, vector<16x128xbf16>
    %c0_4 = arith.constant 0 : index
    %c0_5 = arith.constant 0 : index
    %5 = vector.load %arg4[%c0_4, %c0_5] : memref<128x128xbf16, #tpu.memory_space<vmem>>, vector<128x128xbf16>
    %cst = arith.constant dense<0.000000e+00> : vector<16x128xf32>
    %6 = tpu.matmul %4, %5, %cst {dimension_numbers = #tpu.dot_dimension_numbers<[1], [0], [0], [1], [0, 0, 1, 1], [], []>} : vector<16x128xbf16>, vector<128x128xbf16>, vector<16x128xf32> -> vector<16x128xf32>
    %7 = arith.addf %3, %6 : vector<16x128xf32>
    %c0_6 = arith.constant 0 : index
    %c0_7 = arith.constant 0 : index
    %8 = vector.load %arg7[%c0_6, %c0_7] : memref<16x128xf32, #tpu.memory_space<vmem>>, vector<16x128xf32>
    tpu.vector_store %arg7[%c0_6, %c0_7], %7 {strides = array<i32>} : memref<16x128xf32, #tpu.memory_space<vmem>>, vector<16x128xf32>,
    %c0_i32_8 = arith.constant 0 : i32
    %9 = arith.cmpi eq, %arg2, %c0_i32_8 : i32
    %10 = arith.extui %9 : i1 to i32
    %c0_i32_9 = arith.constant 0 : i32
    %11 = arith.cmpi ne, %10, %c0_i32_9 : i32
    scf.if %11 {
      %c0_10 = arith.constant 0 : index
      %c0_11 = arith.constant 0 : index
      %12 = vector.load %arg7[%c0_10, %c0_11] : memref<16x128xf32, #tpu.memory_space<vmem>>, vector<16x128xf32>
      %c0_12 = arith.constant 0 : index
      %c0_13 = arith.constant 0 : index
      %13 = vector.load %arg5[%c0_12, %c0_13] : memref<1x128xf32, #tpu.memory_space<vmem>>, vector<1x128xf32>
      %14 = vector.broadcast %13 : vector<1x128xf32> to vector<16x128xf32>
      %15 = arith.addf %12, %14 : vector<16x128xf32>
      %c0_14 = arith.constant 0 : index
      %c0_15 = arith.constant 0 : index
      %16 = vector.load %arg6[%c0_14, %c0_15] : memref<16x128xf32, #tpu.memory_space<vmem>>, vector<16x128xf32>
      tpu.vector_store %arg6[%c0_14, %c0_15], %15 {strides = array<i32>} : memref<16x128xf32, #tpu.memory_space<vmem>>, vector<16x128xf32>,
    } else {
    }
    return
  }
  func.func @transform_0(%arg0: i32, %arg1: i32, %arg2: i32) -> (i32, i32) {
    %c0_i32 = arith.constant 0 : i32
    return %arg0, %arg2 : i32, i32
  }
  func.func @transform_1(%arg0: i32, %arg1: i32, %arg2: i32) -> (i32, i32) {
    %c0_i32 = arith.constant 0 : i32
    return %arg2, %arg1 : i32, i32
  }
  func.func @transform_2(%arg0: i32, %arg1: i32, %arg2: i32) -> (i32, i32) {
    %c0_i32 = arith.constant 0 : i32
    %c0_i32_0 = arith.constant 0 : i32
    return %c0_i32, %arg1 : i32, i32
  }
  func.func @transform_3(%arg0: i32, %arg1: i32, %arg2: i32) -> (i32, i32) {
    %c0_i32 = arith.constant 0 : i32
    return %arg0, %arg1 : i32, i32
  }
}

module attributes {stable_mosaic.version = 11 : i64} {
  func.func @_linear_kernel(%arg0: i32, %arg1: i32, %arg2: i32, %arg3: memref<16x128xbf16, #tpu.memory_space<vmem>>, %arg4: memref<128x128xbf16, #tpu.memory_space<vmem>>, %arg5: memref<1x128xf32, #tpu.memory_space<vmem>>, %arg6: memref<16x128xbf16, #tpu.memory_space<vmem>>, %arg7: memref<16x128xf32, #tpu.memory_space<vmem>>) attributes {dimension_semantics = [#tpu.dimension_semantics<parallel>, #tpu.dimension_semantics<parallel>, #tpu.dimension_semantics<arbitrary>], iteration_bounds = array<i64: 1, 1, 1>, scalar_prefetch = 0 : i64, scratch_operands = 1 : i64, tpu.core_type = #tpu.core_type<tc>, window_params = [{transform_indices = @transform_0, window_bounds = array<i64: 16, 128>}, {transform_indices = @transform_1, window_bounds = array<i64: 128, 128>}, {transform_indices = @transform_2, window_bounds = array<i64: 1, 128>}, {transform_indices = @transform_3, window_bounds = array<i64: 16, 128>}]} {
    %c0_i32 = arith.constant 0 : i32
    %0 = arith.cmpi eq, %arg2, %c0_i32 : i32
    %1 = arith.extui %0 : i1 to i32
    %c0_i32_0 = arith.constant 0 : i32
    %2 = arith.cmpi ne, %1, %c0_i32_0 : i32
    scf.if %2 {
      %cst_10 = arith.constant 0.000000e+00 : f32
      %12 = vector.broadcast %cst_10 : f32 to vector<16x128xf32>
      %c0_11 = arith.constant 0 : index
      %c0_12 = arith.constant 0 : index
      %13 = vector.load %arg7[%c0_11, %c0_12] : memref<16x128xf32, #tpu.memory_space<vmem>>, vector<16x128xf32>
      tpu.vector_store %arg7[%c0_11, %c0_12], %12 {strides = array<i32>} : memref<16x128xf32, #tpu.memory_space<vmem>>, vector<16x128xf32>,
    } else {
    }
    %c0 = arith.constant 0 : index
    %c0_1 = arith.constant 0 : index
    %3 = vector.load %arg7[%c0, %c0_1] : memref<16x128xf32, #tpu.memory_space<vmem>>, vector<16x128xf32>
    %c0_2 = arith.constant 0 : index
    %c0_3 = arith.constant 0 : index
    %4 = vector.load %arg3[%c0_2, %c0_3] : memref<16x128xbf16, #tpu.memory_space<vmem>>, vector<16x128xbf16>
    %c0_4 = arith.constant 0 : index
    %c0_5 = arith.constant 0 : index
    %5 = vector.load %arg4[%c0_4, %c0_5] : memref<128x128xbf16, #tpu.memory_space<vmem>>, vector<128x128xbf16>
    %cst = arith.constant dense<0.000000e+00> : vector<16x128xf32>
    %6 = tpu.matmul %4, %5, %cst {dimension_numbers = #tpu.dot_dimension_numbers<[1], [0], [0], [1], [0, 0, 1, 1], [], []>} : vector<16x128xbf16>, vector<128x128xbf16>, vector<16x128xf32> -> vector<16x128xf32>
    %7 = arith.addf %3, %6 : vector<16x128xf32>
    %c0_6 = arith.constant 0 : index
    %c0_7 = arith.constant 0 : index
    %8 = vector.load %arg7[%c0_6, %c0_7] : memref<16x128xf32, #tpu.memory_space<vmem>>, vector<16x128xf32>
    tpu.vector_store %arg7[%c0_6, %c0_7], %7 {strides = array<i32>} : memref<16x128xf32, #tpu.memory_space<vmem>>, vector<16x128xf32>,
    %c0_i32_8 = arith.constant 0 : i32
    %9 = arith.cmpi eq, %arg2, %c0_i32_8 : i32
    %10 = arith.extui %9 : i1 to i32
    %c0_i32_9 = arith.constant 0 : i32
    %11 = arith.cmpi ne, %10, %c0_i32_9 : i32
    scf.if %11 {
      %c0_10 = arith.constant 0 : index
      %c0_11 = arith.constant 0 : index
      %12 = vector.load %arg7[%c0_10, %c0_11] : memref<16x128xf32, #tpu.memory_space<vmem>>, vector<16x128xf32>
      %c0_12 = arith.constant 0 : index
      %c0_13 = arith.constant 0 : index
      %13 = vector.load %arg5[%c0_12, %c0_13] : memref<1x128xf32, #tpu.memory_space<vmem>>, vector<1x128xf32>
      %14 = vector.broadcast %13 : vector<1x128xf32> to vector<16x128xf32>
      %15 = arith.addf %12, %14 : vector<16x128xf32>
      %cst_14 = arith.constant 0.000000e+00 : f32
      %16 = vector.broadcast %cst_14 : f32 to vector<16x128xf32>
      %17 = arith.maximumf %15, %16 : vector<16x128xf32>
      %18 = arith.truncf %17 : vector<16x128xf32> to vector<16x128xbf16>
      %c0_15 = arith.constant 0 : index
      %c0_16 = arith.constant 0 : index
      %19 = vector.load %arg6[%c0_15, %c0_16] : memref<16x128xbf16, #tpu.memory_space<vmem>>, vector<16x128xbf16>
      tpu.vector_store %arg6[%c0_15, %c0_16], %18 {strides = array<i32>} : memref<16x128xbf16, #tpu.memory_space<vmem>>, vector<16x128xbf16>,
    } else {
    }
    return
  }
  func.func @transform_0(%arg0: i32, %arg1: i32, %arg2: i32) -> (i32, i32) {
    %c0_i32 = arith.constant 0 : i32
    return %arg0, %arg2 : i32, i32
  }
  func.func @transform_1(%arg0: i32, %arg1: i32, %arg2: i32) -> (i32, i32) {
    %c0_i32 = arith.constant 0 : i32
    return %arg2, %arg1 : i32, i32
  }
  func.func @transform_2(%arg0: i32, %arg1: i32, %arg2: i32) -> (i32, i32) {
    %c0_i32 = arith.constant 0 : i32
    %c0_i32_0 = arith.constant 0 : i32
    return %c0_i32, %arg1 : i32, i32
  }
  func.func @transform_3(%arg0: i32, %arg1: i32, %arg2: i32) -> (i32, i32) {
    %c0_i32 = arith.constant 0 : i32
    return %arg0, %arg1 : i32, i32
  }
}

module attributes {stable_mosaic.version = 11 : i64} {
  func.func @_biatt_kernel(%arg0: i32, %arg1: memref<1x8x32xbf16, #tpu.memory_space<vmem>>, %arg2: memref<1x8x32xbf16, #tpu.memory_space<vmem>>, %arg3: memref<2x32xf32, #tpu.memory_space<vmem>>, %arg4: memref<1x16xf32, #tpu.memory_space<vmem>>, %arg5: memref<1x1x8xf32, #tpu.memory_space<vmem>>, %arg6: memref<1x1x16xf32, #tpu.memory_space<vmem>>, %arg7: memref<1x8x16xbf16, #tpu.memory_space<vmem>>, %arg8: memref<1x2x8xf32, #tpu.memory_space<vmem>>) attributes {dimension_semantics = [#tpu.dimension_semantics<parallel>], iteration_bounds = array<i64: 2>, scalar_prefetch = 0 : i64, scratch_operands = 0 : i64, tpu.core_type = #tpu.core_type<tc>, window_params = [{transform_indices = @transform_0, window_bounds = array<i64: 1, 8, 32>}, {transform_indices = @transform_1, window_bounds = array<i64: 1, 8, 32>}, {pipeline_mode = #tpu.pipeline_mode<synchronous>, transform_indices = @transform_2, window_bounds = array<i64: 2, 32>}, {pipeline_mode = #tpu.pipeline_mode<synchronous>, transform_indices = @transform_3, window_bounds = array<i64: 1, 16>}, {transform_indices = @transform_4, window_bounds = array<i64: 1, 1, 8>}, {transform_indices = @transform_5, window_bounds = array<i64: 1, 1, 16>}, {transform_indices = @transform_6, window_bounds = array<i64: 1, 8, 16>}, {transform_indices = @transform_7, window_bounds = array<i64: 1, 2, 8>}]} {
    %c0 = arith.constant 0 : index
    %c0_0 = arith.constant 0 : index
    %c0_1 = arith.constant 0 : index
    %0 = vector.load %arg1[%c0, %c0_0, %c0_1] : memref<1x8x32xbf16, #tpu.memory_space<vmem>>, vector<1x8x32xbf16>
    %c0_2 = arith.constant 0 : index
    %c0_3 = arith.constant 0 : index
    %c0_4 = arith.constant 0 : index
    %1 = vector.load %arg2[%c0_2, %c0_3, %c0_4] : memref<1x8x32xbf16, #tpu.memory_space<vmem>>, vector<1x8x32xbf16>
    %2 = arith.extf %1 : vector<1x8x32xbf16> to vector<1x8x32xf32>
    %c0_5 = arith.constant 0 : index
    %c0_6 = arith.constant 0 : index
    %3 = vector.load %arg3[%c0_5, %c0_6] : memref<2x32xf32, #tpu.memory_space<vmem>>, vector<2x32xf32>
    %4 = vector.extract_strided_slice %3 {offsets = [0, 0], sizes = [1, 32], strides = [1, 1]} : vector<2x32xf32> to vector<1x32xf32>
    %5 = vector.shape_cast %4 : vector<1x32xf32> to vector<32xf32>
    %6 = vector.shape_cast %5 : vector<32xf32> to vector<1x1x32xf32>
    %7 = vector.broadcast %6 : vector<1x1x32xf32> to vector<1x8x32xf32>
    %8 = arith.mulf %2, %7 : vector<1x8x32xf32>
    %9 = arith.truncf %8 : vector<1x8x32xf32> to vector<1x8x32xbf16>
    %10 = vector.extract_strided_slice %3 {offsets = [1, 0], sizes = [1, 32], strides = [1, 1]} : vector<2x32xf32> to vector<1x32xf32>
    %11 = vector.shape_cast %10 : vector<1x32xf32> to vector<32xf32>
    %12 = vector.shape_cast %11 : vector<32xf32> to vector<1x1x32xf32>
    %13 = vector.broadcast %12 : vector<1x1x32xf32> to vector<1x8x32xf32>
    %14 = arith.mulf %2, %13 : vector<1x8x32xf32>
    %15 = arith.truncf %14 : vector<1x8x32xf32> to vector<1x8x32xbf16>
    %16 = tpu.concatenate %9, %15 in 1 : vector<1x8x32xbf16>, vector<1x8x32xbf16> -> vector<1x16x32xbf16>
    "tpu.trace_start"() <{level = 10 : i32, message = "bnm,bkm->bnk"}> : () -> ()
    %cst = arith.constant dense<0.000000e+00> : vector<1x8x16xf32>
    %17 = tpu.matmul %0, %16, %cst {dimension_numbers = #tpu.dot_dimension_numbers<[2], [2], [1], [1], [0, 0, 0, 1, 1, 1], [0], [0]>} : vector<1x8x32xbf16>, vector<1x16x32xbf16>, vector<1x8x16xf32> -> vector<1x8x16xf32>
    "tpu.trace_stop"() : () -> ()
    %c0_7 = arith.constant 0 : index
    %c0_8 = arith.constant 0 : index
    %18 = vector.load %arg4[%c0_7, %c0_8] : memref<1x16xf32, #tpu.memory_space<vmem>>, vector<1x16xf32>
    %19 = vector.shape_cast %18 : vector<1x16xf32> to vector<1x1x16xf32>
    %20 = vector.broadcast %19 : vector<1x1x16xf32> to vector<1x8x16xf32>
    %21 = arith.addf %17, %20 : vector<1x8x16xf32>
    %c0_9 = arith.constant 0 : index
    %c0_10 = arith.constant 0 : index
    %c0_11 = arith.constant 0 : index
    %22 = vector.load %arg5[%c0_9, %c0_10, %c0_11] : memref<1x1x8xf32, #tpu.memory_space<vmem>>, vector<1x1x8xf32>
    %23 = vector.shape_cast %22 : vector<1x1x8xf32> to vector<1x8xf32>
    %c0_12 = arith.constant 0 : index
    %c0_13 = arith.constant 0 : index
    %c0_14 = arith.constant 0 : index
    %24 = vector.load %arg6[%c0_12, %c0_13, %c0_14] : memref<1x1x16xf32, #tpu.memory_space<vmem>>, vector<1x1x16xf32>
    %25 = vector.shape_cast %24 : vector<1x1x16xf32> to vector<1x16xf32>
    %26 = vector.shape_cast %23 : vector<1x8xf32> to vector<1x8x1xf32>
    %27 = vector.shape_cast %25 : vector<1x16xf32> to vector<1x1x16xf32>
    %28 = vector.broadcast %26 : vector<1x8x1xf32> to vector<1x8x16xf32>
    %29 = vector.broadcast %27 : vector<1x1x16xf32> to vector<1x8x16xf32>
    %30 = arith.mulf %28, %29 : vector<1x8x16xf32>
    %cst_15 = arith.constant 0.000000e+00 : f32
    %31 = vector.broadcast %cst_15 : f32 to vector<1x8x16xf32>
    %32 = arith.cmpf ogt, %30, %31 : vector<1x8x16xf32>
    %cst_16 = arith.constant -1.000000e+30 : f32
    %33 = vector.broadcast %cst_16 : f32 to vector<1x8x16xf32>
    %34 = arith.select %32, %21, %33 : vector<1x8x16xi1>, vector<1x8x16xf32>
    %35 = vector.extract_strided_slice %34 {offsets = [0, 0, 0], sizes = [1, 8, 8], strides = [1, 1, 1]} : vector<1x8x16xf32> to vector<1x8x8xf32>
    %cst_17 = arith.constant dense<0xFF800000> : vector<1x8xf32>
    %36 = vector.multi_reduction <maximumf>, %35, %cst_17 [2] : vector<1x8x8xf32> to vector<1x8xf32>
    %37 = vector.shape_cast %36 : vector<1x8xf32> to vector<1x1x8xf32>
    %c0_18 = arith.constant 0 : index
    %c0_19 = arith.constant 0 : index
    %c0_20 = arith.constant 0 : index
    %38 = vector.load %arg8[%c0_18, %c0_19, %c0_20] : memref<1x2x8xf32, #tpu.memory_space<vmem>>, vector<1x1x8xf32>
    tpu.vector_store %arg8[%c0_18, %c0_19, %c0_20], %37 {strides = array<i32>} : memref<1x2x8xf32, #tpu.memory_space<vmem>>, vector<1x1x8xf32>,
    %cst_21 = arith.constant dense<0xFF800000> : vector<1xf32>
    %39 = vector.multi_reduction <maximumf>, %35, %cst_21 [1, 2] : vector<1x8x8xf32> to vector<1xf32>
    %40 = vector.shape_cast %39 : vector<1xf32> to vector<1x1x1xf32>
    %41 = vector.broadcast %40 : vector<1x1x1xf32> to vector<1x8x8xf32>
    %42 = arith.subf %35, %41 : vector<1x8x8xf32>
    %43 = math.exp %42 : vector<1x8x8xf32>
    %cst_22 = arith.constant dense<0.000000e+00> : vector<1xf32>
    %44 = vector.multi_reduction <add>, %43, %cst_22 [1, 2] : vector<1x8x8xf32> to vector<1xf32>
    %45 = vector.shape_cast %44 : vector<1xf32> to vector<1x1x1xf32>
    %cst_23 = arith.constant 1.000000e+00 : f32
    %46 = vector.broadcast %cst_23 : f32 to vector<1x1x1xf32>
    %47 = arith.divf %46, %45 : vector<1x1x1xf32>
    %48 = vector.broadcast %47 : vector<1x1x1xf32> to vector<1x8x8xf32>
    %49 = arith.mulf %43, %48 : vector<1x8x8xf32>
    %50 = arith.truncf %49 : vector<1x8x8xf32> to vector<1x8x8xbf16>
    %c0_24 = arith.constant 0 : index
    %c0_25 = arith.constant 0 : index
    %c0_26 = arith.constant 0 : index
    %51 = vector.load %arg7[%c0_24, %c0_25, %c0_26] : memref<1x8x16xbf16, #tpu.memory_space<vmem>>, vector<1x8x8xbf16>
    tpu.vector_store %arg7[%c0_24, %c0_25, %c0_26], %50 {strides = array<i32>} : memref<1x8x16xbf16, #tpu.memory_space<vmem>>, vector<1x8x8xbf16>,
    %52 = vector.extract_strided_slice %34 {offsets = [0, 0, 8], sizes = [1, 8, 8], strides = [1, 1, 1]} : vector<1x8x16xf32> to vector<1x8x8xf32>
    %cst_27 = arith.constant dense<0xFF800000> : vector<1x8xf32>
    %53 = vector.multi_reduction <maximumf>, %52, %cst_27 [2] : vector<1x8x8xf32> to vector<1x8xf32>
    %54 = vector.shape_cast %53 : vector<1x8xf32> to vector<1x1x8xf32>
    %c0_28 = arith.constant 0 : index
    %c1 = arith.constant 1 : index
    %c0_29 = arith.constant 0 : index
    %55 = vector.load %arg8[%c0_28, %c1, %c0_29] : memref<1x2x8xf32, #tpu.memory_space<vmem>>, vector<1x1x8xf32>
    tpu.vector_store %arg8[%c0_28, %c1, %c0_29], %54 {strides = array<i32>} : memref<1x2x8xf32, #tpu.memory_space<vmem>>, vector<1x1x8xf32>,
    %cst_30 = arith.constant dense<0xFF800000> : vector<1xf32>
    %56 = vector.multi_reduction <maximumf>, %52, %cst_30 [1, 2] : vector<1x8x8xf32> to vector<1xf32>
    %57 = vector.shape_cast %56 : vector<1xf32> to vector<1x1x1xf32>
    %58 = vector.broadcast %57 : vector<1x1x1xf32> to vector<1x8x8xf32>
    %59 = arith.subf %52, %58 : vector<1x8x8xf32>
    %60 = math.exp %59 : vector<1x8x8xf32>
    %cst_31 = arith.constant dense<0.000000e+00> : vector<1xf32>
    %61 = vector.multi_reduction <add>, %60, %cst_31 [1, 2] : vector<1x8x8xf32> to vector<1xf32>
    %62 = vector.shape_cast %61 : vector<1xf32> to vector<1x1x1xf32>
    %cst_32 = arith.constant 1.000000e+00 : f32
    %63 = vector.broadcast %cst_32 : f32 to vector<1x1x1xf32>
    %64 = arith.divf %63, %62 : vector<1x1x1xf32>
    %65 = vector.broadcast %64 : vector<1x1x1xf32> to vector<1x8x8xf32>
    %66 = arith.mulf %60, %65 : vector<1x8x8xf32>
    %67 = arith.truncf %66 : vector<1x8x8xf32> to vector<1x8x8xbf16>
    %c0_33 = arith.constant 0 : index
    %c0_34 = arith.constant 0 : index
    %c8 = arith.constant 8 : index
    %68 = vector.load %arg7[%c0_33, %c0_34, %c8] : memref<1x8x16xbf16, #tpu.memory_space<vmem>>, vector<1x8x8xbf16>
    tpu.vector_store %arg7[%c0_33, %c0_34, %c8], %67 {strides = array<i32>} : memref<1x8x16xbf16, #tpu.memory_space<vmem>>, vector<1x8x8xbf16>,
    return
  }
  func.func @transform_0(%arg0: i32) -> (i32, i32, i32) {
    %c0_i32 = arith.constant 0 : i32
    %c0_i32_0 = arith.constant 0 : i32
    %c0_i32_1 = arith.constant 0 : i32
    return %arg0, %c0_i32, %c0_i32_0 : i32, i32, i32
  }
  func.func @transform_1(%arg0: i32) -> (i32, i32, i32) {
    %c0_i32 = arith.constant 0 : i32
    %c0_i32_0 = arith.constant 0 : i32
    %c0_i32_1 = arith.constant 0 : i32
    return %arg0, %c0_i32, %c0_i32_0 : i32, i32, i32
  }
  func.func @transform_2(%arg0: i32) -> (i32, i32) {
    %c0_i32 = arith.constant 0 : i32
    %c0_i32_0 = arith.constant 0 : i32
    %c0_i32_1 = arith.constant 0 : i32
    return %c0_i32, %c0_i32_0 : i32, i32
  }
  func.func @transform_3(%arg0: i32) -> (i32, i32) {
    %c0_i32 = arith.constant 0 : i32
    %c0_i32_0 = arith.constant 0 : i32
    %c0_i32_1 = arith.constant 0 : i32
    return %c0_i32, %c0_i32_0 : i32, i32
  }
  func.func @transform_4(%arg0: i32) -> (i32, i32, i32) {
    %c0_i32 = arith.constant 0 : i32
    %c0_i32_0 = arith.constant 0 : i32
    %c0_i32_1 = arith.constant 0 : i32
    return %arg0, %c0_i32, %c0_i32_0 : i32, i32, i32
  }
  func.func @transform_5(%arg0: i32) -> (i32, i32, i32) {
    %c0_i32 = arith.constant 0 : i32
    %c0_i32_0 = arith.constant 0 : i32
    %c0_i32_1 = arith.constant 0 : i32
    return %arg0, %c0_i32, %c0_i32_0 : i32, i32, i32
  }
  func.func @transform_6(%arg0: i32) -> (i32, i32, i32) {
    %c0_i32 = arith.constant 0 : i32
    %c0_i32_0 = arith.constant 0 : i32
    %c0_i32_1 = arith.constant 0 : i32
    return %arg0, %c0_i32, %c0_i32_0 : i32, i32, i32
  }
  func.func @transform_7(%arg0: i32) -> (i32, i32, i32) {
    %c0_i32 = arith.constant 0 : i32
    %c0_i32_0 = arith.constant 0 : i32
    %c0_i32_1 = arith.constant 0 : i32
    return %arg0, %c0_i32, %c0_i32_0 : i32, i32, i32
  }
}

module attributes {stable_mosaic.version = 11 : i64} {
  func.func @_glimpse_kernel(%arg0: i32, %arg1: memref<1x8x16xbf16, #tpu.memory_space<vmem>>, %arg2: memref<1x1x8x32xbf16, #tpu.memory_space<vmem>>, %arg3: memref<1x8x32xbf16, #tpu.memory_space<vmem>>, %arg4: memref<32x32xbf16, #tpu.memory_space<vmem>>, %arg5: memref<1x32xf32, #tpu.memory_space<vmem>>, %arg6: memref<1x1x32xf32, #tpu.memory_space<vmem>>) attributes {dimension_semantics = [#tpu.dimension_semantics<parallel>], iteration_bounds = array<i64: 2>, scalar_prefetch = 0 : i64, scratch_operands = 0 : i64, tpu.core_type = #tpu.core_type<tc>, window_params = [{transform_indices = @transform_0, window_bounds = array<i64: 1, 8, 16>}, {transform_indices = @transform_1, window_bounds = array<i64: 1, 1, 8, 32>}, {transform_indices = @transform_2, window_bounds = array<i64: 1, 8, 32>}, {pipeline_mode = #tpu.pipeline_mode<synchronous>, transform_indices = @transform_3, window_bounds = array<i64: 32, 32>}, {pipeline_mode = #tpu.pipeline_mode<synchronous>, transform_indices = @transform_4, window_bounds = array<i64: 1, 32>}, {transform_indices = @transform_5, window_bounds = array<i64: 1, 1, 32>}]} {
    %c0 = arith.constant 0 : index
    %c0_0 = arith.constant 0 : index
    %c0_1 = arith.constant 0 : index
    %0 = vector.load %arg1[%c0, %c0_0, %c0_1] : memref<1x8x16xbf16, #tpu.memory_space<vmem>>, vector<1x8x16xbf16>
    %1 = vector.extract_strided_slice %0 {offsets = [0, 0, 0], sizes = [1, 8, 8], strides = [1, 1, 1]} : vector<1x8x16xbf16> to vector<1x8x8xbf16>
    %c0_2 = arith.constant 0 : index
    %c0_3 = arith.constant 0 : index
    %c0_4 = arith.constant 0 : index
    %c0_5 = arith.constant 0 : index
    %2 = vector.load %arg2[%c0_2, %c0_3, %c0_4, %c0_5] : memref<1x1x8x32xbf16, #tpu.memory_space<vmem>>, vector<1x1x8x32xbf16>
    %3 = vector.shape_cast %2 : vector<1x1x8x32xbf16> to vector<1x8x32xbf16>
    %c0_6 = arith.constant 0 : index
    %c0_7 = arith.constant 0 : index
    %c0_8 = arith.constant 0 : index
    %4 = vector.load %arg3[%c0_6, %c0_7, %c0_8] : memref<1x8x32xbf16, #tpu.memory_space<vmem>>, vector<1x8x32xbf16>
    "tpu.trace_start"() <{level = 10 : i32, message = "bnq,bnm->bqm"}> : () -> ()
    %cst = arith.constant dense<0.000000e+00> : vector<1x8x32xf32>
    %5 = tpu.matmul %1, %3, %cst {dimension_numbers = #tpu.dot_dimension_numbers<[1], [1], [2], [2], [0, 0, 0, 2, 1, 2], [0], [0]>} : vector<1x8x8xbf16>, vector<1x8x32xbf16>, vector<1x8x32xf32> -> vector<1x8x32xf32>
    "tpu.trace_stop"() : () -> ()
    %6 = arith.extf %4 : vector<1x8x32xbf16> to vector<1x8x32xf32>
    %7 = arith.mulf %5, %6 : vector<1x8x32xf32>
    %cst_9 = arith.constant dense<0.000000e+00> : vector<1x32xf32>
    %8 = vector.multi_reduction <add>, %7, %cst_9 [1] : vector<1x8x32xf32> to vector<1x32xf32>
    %9 = arith.truncf %8 : vector<1x32xf32> to vector<1x32xbf16>
    %c0_10 = arith.constant 0 : index
    %c0_11 = arith.constant 0 : index
    %10 = vector.load %arg4[%c0_10, %c0_11] : memref<32x32xbf16, #tpu.memory_space<vmem>>, vector<32x32xbf16>
    %cst_12 = arith.constant dense<0.000000e+00> : vector<1x32xf32>
    %11 = tpu.matmul %9, %10, %cst_12 {dimension_numbers = #tpu.dot_dimension_numbers<[1], [0], [0], [1], [0, 0, 1, 1], [], []>} : vector<1x32xbf16>, vector<32x32xbf16>, vector<1x32xf32> -> vector<1x32xf32>
    %c0_13 = arith.constant 0 : index
    %c0_14 = arith.constant 0 : index
    %12 = vector.load %arg5[%c0_13, %c0_14] : memref<1x32xf32, #tpu.memory_space<vmem>>, vector<1x32xf32>
    %13 = arith.addf %11, %12 : vector<1x32xf32>
    %14 = vector.shape_cast %13 : vector<1x32xf32> to vector<1x1x32xf32>
    %c0_15 = arith.constant 0 : index
    %c0_16 = arith.constant 0 : index
    %c0_17 = arith.constant 0 : index
    %15 = vector.load %arg6[%c0_15, %c0_16, %c0_17] : memref<1x1x32xf32, #tpu.memory_space<vmem>>, vector<1x1x32xf32>
    tpu.vector_store %arg6[%c0_15, %c0_16, %c0_17], %14 {strides = array<i32>} : memref<1x1x32xf32, #tpu.memory_space<vmem>>, vector<1x1x32xf32>,
    return
  }
  func.func @transform_0(%arg0: i32) -> (i32, i32, i32) {
    %c0_i32 = arith.constant 0 : i32
    %c0_i32_0 = arith.constant 0 : i32
    %c0_i32_1 = arith.constant 0 : i32
    return %arg0, %c0_i32, %c0_i32_0 : i32, i32, i32
  }
  func.func @transform_1(%arg0: i32) -> (i32, i32, i32, i32) {
    %c0_i32 = arith.constant 0 : i32
    %c0_i32_0 = arith.constant 0 : i32
    %c0_i32_1 = arith.constant 0 : i32
    %c0_i32_2 = arith.constant 0 : i32
    return %c0_i32, %arg0, %c0_i32_0, %c0_i32_1 : i32, i32, i32, i32
  }
  func.func @transform_2(%arg0: i32) -> (i32, i32, i32) {
    %c0_i32 = arith.constant 0 : i32
    %c0_i32_0 = arith.constant 0 : i32
    %c0_i32_1 = arith.constant 0 : i32
    return %arg0, %c0_i32, %c0_i32_0 : i32, i32, i32
  }
  func.func @transform_3(%arg0: i32) -> (i32, i32) {
    %c0_i32 = arith.constant 0 : i32
    %c0_i32_0 = arith.constant 0 : i32
    %c0_i32_1 = arith.constant 0 : i32
    return %c0_i32, %c0_i32_0 : i32, i32
  }
  func.func @transform_4(%arg0: i32) -> (i32, i32) {
    %c0_i32 = arith.constant 0 : i32
    %c0_i32_0 = arith.constant 0 : i32
    %c0_i32_1 = arith.constant 0 : i32
    return %c0_i32, %c0_i32_0 : i32, i32
  }
  func.func @transform_5(%arg0: i32) -> (i32, i32, i32) {
    %c0_i32 = arith.constant 0 : i32
    %c0_i32_0 = arith.constant 0 : i32
    %c0_i32_1 = arith.constant 0 : i32
    return %arg0, %c0_i32, %c0_i32_0 : i32, i32, i32
  }
}

module attributes {stable_mosaic.version = 11 : i64} {
  func.func @_glimpse_kernel(%arg0: i32, %arg1: memref<1x8x16xbf16, #tpu.memory_space<vmem>>, %arg2: memref<1x1x8x32xbf16, #tpu.memory_space<vmem>>, %arg3: memref<1x8x32xbf16, #tpu.memory_space<vmem>>, %arg4: memref<32x32xbf16, #tpu.memory_space<vmem>>, %arg5: memref<1x32xf32, #tpu.memory_space<vmem>>, %arg6: memref<1x1x32xf32, #tpu.memory_space<vmem>>) attributes {dimension_semantics = [#tpu.dimension_semantics<parallel>], iteration_bounds = array<i64: 2>, scalar_prefetch = 0 : i64, scratch_operands = 0 : i64, tpu.core_type = #tpu.core_type<tc>, window_params = [{transform_indices = @transform_0, window_bounds = array<i64: 1, 8, 16>}, {transform_indices = @transform_1, window_bounds = array<i64: 1, 1, 8, 32>}, {transform_indices = @transform_2, window_bounds = array<i64: 1, 8, 32>}, {pipeline_mode = #tpu.pipeline_mode<synchronous>, transform_indices = @transform_3, window_bounds = array<i64: 32, 32>}, {pipeline_mode = #tpu.pipeline_mode<synchronous>, transform_indices = @transform_4, window_bounds = array<i64: 1, 32>}, {transform_indices = @transform_5, window_bounds = array<i64: 1, 1, 32>}]} {
    %c0 = arith.constant 0 : index
    %c0_0 = arith.constant 0 : index
    %c0_1 = arith.constant 0 : index
    %0 = vector.load %arg1[%c0, %c0_0, %c0_1] : memref<1x8x16xbf16, #tpu.memory_space<vmem>>, vector<1x8x16xbf16>
    %1 = vector.extract_strided_slice %0 {offsets = [0, 0, 8], sizes = [1, 8, 8], strides = [1, 1, 1]} : vector<1x8x16xbf16> to vector<1x8x8xbf16>
    %c0_2 = arith.constant 0 : index
    %c0_3 = arith.constant 0 : index
    %c0_4 = arith.constant 0 : index
    %c0_5 = arith.constant 0 : index
    %2 = vector.load %arg2[%c0_2, %c0_3, %c0_4, %c0_5] : memref<1x1x8x32xbf16, #tpu.memory_space<vmem>>, vector<1x1x8x32xbf16>
    %3 = vector.shape_cast %2 : vector<1x1x8x32xbf16> to vector<1x8x32xbf16>
    %c0_6 = arith.constant 0 : index
    %c0_7 = arith.constant 0 : index
    %c0_8 = arith.constant 0 : index
    %4 = vector.load %arg3[%c0_6, %c0_7, %c0_8] : memref<1x8x32xbf16, #tpu.memory_space<vmem>>, vector<1x8x32xbf16>
    "tpu.trace_start"() <{level = 10 : i32, message = "bnq,bnm->bqm"}> : () -> ()
    %cst = arith.constant dense<0.000000e+00> : vector<1x8x32xf32>
    %5 = tpu.matmul %1, %3, %cst {dimension_numbers = #tpu.dot_dimension_numbers<[1], [1], [2], [2], [0, 0, 0, 2, 1, 2], [0], [0]>} : vector<1x8x8xbf16>, vector<1x8x32xbf16>, vector<1x8x32xf32> -> vector<1x8x32xf32>
    "tpu.trace_stop"() : () -> ()
    %6 = arith.extf %4 : vector<1x8x32xbf16> to vector<1x8x32xf32>
    %7 = arith.mulf %5, %6 : vector<1x8x32xf32>
    %cst_9 = arith.constant dense<0.000000e+00> : vector<1x32xf32>
    %8 = vector.multi_reduction <add>, %7, %cst_9 [1] : vector<1x8x32xf32> to vector<1x32xf32>
    %9 = arith.truncf %8 : vector<1x32xf32> to vector<1x32xbf16>
    %c0_10 = arith.constant 0 : index
    %c0_11 = arith.constant 0 : index
    %10 = vector.load %arg4[%c0_10, %c0_11] : memref<32x32xbf16, #tpu.memory_space<vmem>>, vector<32x32xbf16>
    %cst_12 = arith.constant dense<0.000000e+00> : vector<1x32xf32>
    %11 = tpu.matmul %9, %10, %cst_12 {dimension_numbers = #tpu.dot_dimension_numbers<[1], [0], [0], [1], [0, 0, 1, 1], [], []>} : vector<1x32xbf16>, vector<32x32xbf16>, vector<1x32xf32> -> vector<1x32xf32>
    %c0_13 = arith.constant 0 : index
    %c0_14 = arith.constant 0 : index
    %12 = vector.load %arg5[%c0_13, %c0_14] : memref<1x32xf32, #tpu.memory_space<vmem>>, vector<1x32xf32>
    %13 = arith.addf %11, %12 : vector<1x32xf32>
    %14 = vector.shape_cast %13 : vector<1x32xf32> to vector<1x1x32xf32>
    %c0_15 = arith.constant 0 : index
    %c0_16 = arith.constant 0 : index
    %c0_17 = arith.constant 0 : index
    %15 = vector.load %arg6[%c0_15, %c0_16, %c0_17] : memref<1x1x32xf32, #tpu.memory_space<vmem>>, vector<1x1x32xf32>
    tpu.vector_store %arg6[%c0_15, %c0_16, %c0_17], %14 {strides = array<i32>} : memref<1x1x32xf32, #tpu.memory_space<vmem>>, vector<1x1x32xf32>,
    return
  }
  func.func @transform_0(%arg0: i32) -> (i32, i32, i32) {
    %c0_i32 = arith.constant 0 : i32
    %c0_i32_0 = arith.constant 0 : i32
    %c0_i32_1 = arith.constant 0 : i32
    return %arg0, %c0_i32, %c0_i32_0 : i32, i32, i32
  }
  func.func @transform_1(%arg0: i32) -> (i32, i32, i32, i32) {
    %c1_i32 = arith.constant 1 : i32
    %c0_i32 = arith.constant 0 : i32
    %c0_i32_0 = arith.constant 0 : i32
    %c0_i32_1 = arith.constant 0 : i32
    return %c1_i32, %arg0, %c0_i32, %c0_i32_0 : i32, i32, i32, i32
  }
  func.func @transform_2(%arg0: i32) -> (i32, i32, i32) {
    %c0_i32 = arith.constant 0 : i32
    %c0_i32_0 = arith.constant 0 : i32
    %c0_i32_1 = arith.constant 0 : i32
    return %arg0, %c0_i32, %c0_i32_0 : i32, i32, i32
  }
  func.func @transform_3(%arg0: i32) -> (i32, i32) {
    %c0_i32 = arith.constant 0 : i32
    %c0_i32_0 = arith.constant 0 : i32
    %c0_i32_1 = arith.constant 0 : i32
    return %c0_i32, %c0_i32_0 : i32, i32
  }
  func.func @transform_4(%arg0: i32) -> (i32, i32) {
    %c0_i32 = arith.constant 0 : i32
    %c0_i32_0 = arith.constant 0 : i32
    %c0_i32_1 = arith.constant 0 : i32
    return %c0_i32, %c0_i32_0 : i32, i32
  }
  func.func @transform_5(%arg0: i32) -> (i32, i32, i32) {
    %c0_i32 = arith.constant 0 : i32
    %c0_i32_0 = arith.constant 0 : i32
    %c0_i32_1 = arith.constant 0 : i32
    return %arg0, %c0_i32, %c0_i32_0 : i32, i32, i32
  }
}

module attributes {stable_mosaic.version = 11 : i64} {
  func.func @_linear_kernel(%arg0: i32, %arg1: i32, %arg2: i32, %arg3: memref<8x128xbf16, #tpu.memory_space<vmem>>, %arg4: memref<128x128xbf16, #tpu.memory_space<vmem>>, %arg5: memref<1x128xf32, #tpu.memory_space<vmem>>, %arg6: memref<8x128xf32, #tpu.memory_space<vmem>>, %arg7: memref<8x128xf32, #tpu.memory_space<vmem>>) attributes {dimension_semantics = [#tpu.dimension_semantics<parallel>, #tpu.dimension_semantics<parallel>, #tpu.dimension_semantics<arbitrary>], iteration_bounds = array<i64: 1, 1, 1>, scalar_prefetch = 0 : i64, scratch_operands = 1 : i64, tpu.core_type = #tpu.core_type<tc>, window_params = [{transform_indices = @transform_0, window_bounds = array<i64: 8, 128>}, {transform_indices = @transform_1, window_bounds = array<i64: 128, 128>}, {transform_indices = @transform_2, window_bounds = array<i64: 1, 128>}, {transform_indices = @transform_3, window_bounds = array<i64: 8, 128>}]} {
    %c0_i32 = arith.constant 0 : i32
    %0 = arith.cmpi eq, %arg2, %c0_i32 : i32
    %1 = arith.extui %0 : i1 to i32
    %c0_i32_0 = arith.constant 0 : i32
    %2 = arith.cmpi ne, %1, %c0_i32_0 : i32
    scf.if %2 {
      %cst_10 = arith.constant 0.000000e+00 : f32
      %12 = vector.broadcast %cst_10 : f32 to vector<8x128xf32>
      %c0_11 = arith.constant 0 : index
      %c0_12 = arith.constant 0 : index
      %13 = vector.load %arg7[%c0_11, %c0_12] : memref<8x128xf32, #tpu.memory_space<vmem>>, vector<8x128xf32>
      tpu.vector_store %arg7[%c0_11, %c0_12], %12 {strides = array<i32>} : memref<8x128xf32, #tpu.memory_space<vmem>>, vector<8x128xf32>,
    } else {
    }
    %c0 = arith.constant 0 : index
    %c0_1 = arith.constant 0 : index
    %3 = vector.load %arg7[%c0, %c0_1] : memref<8x128xf32, #tpu.memory_space<vmem>>, vector<8x128xf32>
    %c0_2 = arith.constant 0 : index
    %c0_3 = arith.constant 0 : index
    %4 = vector.load %arg3[%c0_2, %c0_3] : memref<8x128xbf16, #tpu.memory_space<vmem>>, vector<8x128xbf16>
    %c0_4 = arith.constant 0 : index
    %c0_5 = arith.constant 0 : index
    %5 = vector.load %arg4[%c0_4, %c0_5] : memref<128x128xbf16, #tpu.memory_space<vmem>>, vector<128x128xbf16>
    %cst = arith.constant dense<0.000000e+00> : vector<8x128xf32>
    %6 = tpu.matmul %4, %5, %cst {dimension_numbers = #tpu.dot_dimension_numbers<[1], [0], [0], [1], [0, 0, 1, 1], [], []>} : vector<8x128xbf16>, vector<128x128xbf16>, vector<8x128xf32> -> vector<8x128xf32>
    %7 = arith.addf %3, %6 : vector<8x128xf32>
    %c0_6 = arith.constant 0 : index
    %c0_7 = arith.constant 0 : index
    %8 = vector.load %arg7[%c0_6, %c0_7] : memref<8x128xf32, #tpu.memory_space<vmem>>, vector<8x128xf32>
    tpu.vector_store %arg7[%c0_6, %c0_7], %7 {strides = array<i32>} : memref<8x128xf32, #tpu.memory_space<vmem>>, vector<8x128xf32>,
    %c0_i32_8 = arith.constant 0 : i32
    %9 = arith.cmpi eq, %arg2, %c0_i32_8 : i32
    %10 = arith.extui %9 : i1 to i32
    %c0_i32_9 = arith.constant 0 : i32
    %11 = arith.cmpi ne, %10, %c0_i32_9 : i32
    scf.if %11 {
      %c0_10 = arith.constant 0 : index
      %c0_11 = arith.constant 0 : index
      %12 = vector.load %arg7[%c0_10, %c0_11] : memref<8x128xf32, #tpu.memory_space<vmem>>, vector<8x128xf32>
      %c0_12 = arith.constant 0 : index
      %c0_13 = arith.constant 0 : index
      %13 = vector.load %arg5[%c0_12, %c0_13] : memref<1x128xf32, #tpu.memory_space<vmem>>, vector<1x128xf32>
      %14 = vector.broadcast %13 : vector<1x128xf32> to vector<8x128xf32>
      %15 = arith.addf %12, %14 : vector<8x128xf32>
      %cst_14 = arith.constant 0.000000e+00 : f32
      %16 = vector.broadcast %cst_14 : f32 to vector<8x128xf32>
      %17 = arith.maximumf %15, %16 : vector<8x128xf32>
      %c0_15 = arith.constant 0 : index
      %c0_16 = arith.constant 0 : index
      %18 = vector.load %arg6[%c0_15, %c0_16] : memref<8x128xf32, #tpu.memory_space<vmem>>, vector<8x128xf32>
      tpu.vector_store %arg6[%c0_15, %c0_16], %17 {strides = array<i32>} : memref<8x128xf32, #tpu.memory_space<vmem>>, vector<8x128xf32>,
    } else {
    }
    return
  }
  func.func @transform_0(%arg0: i32, %arg1: i32, %arg2: i32) -> (i32, i32) {
    %c0_i32 = arith.constant 0 : i32
    return %arg0, %arg2 : i32, i32
  }
  func.func @transform_1(%arg0: i32, %arg1: i32, %arg2: i32) -> (i32, i32) {
    %c0_i32 = arith.constant 0 : i32
    return %arg2, %arg1 : i32, i32
  }
  func.func @transform_2(%arg0: i32, %arg1: i32, %arg2: i32) -> (i32, i32) {
    %c0_i32 = arith.constant 0 : i32
    %c0_i32_0 = arith.constant 0 : i32
    return %c0_i32, %arg1 : i32, i32
  }
  func.func @transform_3(%arg0: i32, %arg1: i32, %arg2: i32) -> (i32, i32) {
    %c0_i32 = arith.constant 0 : i32
    return %arg0, %arg1 : i32, i32
  }
}

module attributes {stable_mosaic.version = 11 : i64} {
  func.func @_linear_kernel(%arg0: i32, %arg1: i32, %arg2: i32, %arg3: memref<8x128xbf16, #tpu.memory_space<vmem>>, %arg4: memref<128x128xbf16, #tpu.memory_space<vmem>>, %arg5: memref<1x128xf32, #tpu.memory_space<vmem>>, %arg6: memref<8x128xf32, #tpu.memory_space<vmem>>, %arg7: memref<8x128xf32, #tpu.memory_space<vmem>>) attributes {dimension_semantics = [#tpu.dimension_semantics<parallel>, #tpu.dimension_semantics<parallel>, #tpu.dimension_semantics<arbitrary>], iteration_bounds = array<i64: 1, 1, 1>, scalar_prefetch = 0 : i64, scratch_operands = 1 : i64, tpu.core_type = #tpu.core_type<tc>, window_params = [{transform_indices = @transform_0, window_bounds = array<i64: 8, 128>}, {transform_indices = @transform_1, window_bounds = array<i64: 128, 128>}, {transform_indices = @transform_2, window_bounds = array<i64: 1, 128>}, {transform_indices = @transform_3, window_bounds = array<i64: 8, 128>}]} {
    %c0_i32 = arith.constant 0 : i32
    %0 = arith.cmpi eq, %arg2, %c0_i32 : i32
    %1 = arith.extui %0 : i1 to i32
    %c0_i32_0 = arith.constant 0 : i32
    %2 = arith.cmpi ne, %1, %c0_i32_0 : i32
    scf.if %2 {
      %cst_10 = arith.constant 0.000000e+00 : f32
      %12 = vector.broadcast %cst_10 : f32 to vector<8x128xf32>
      %c0_11 = arith.constant 0 : index
      %c0_12 = arith.constant 0 : index
      %13 = vector.load %arg7[%c0_11, %c0_12] : memref<8x128xf32, #tpu.memory_space<vmem>>, vector<8x128xf32>
      tpu.vector_store %arg7[%c0_11, %c0_12], %12 {strides = array<i32>} : memref<8x128xf32, #tpu.memory_space<vmem>>, vector<8x128xf32>,
    } else {
    }
    %c0 = arith.constant 0 : index
    %c0_1 = arith.constant 0 : index
    %3 = vector.load %arg7[%c0, %c0_1] : memref<8x128xf32, #tpu.memory_space<vmem>>, vector<8x128xf32>
    %c0_2 = arith.constant 0 : index
    %c0_3 = arith.constant 0 : index
    %4 = vector.load %arg3[%c0_2, %c0_3] : memref<8x128xbf16, #tpu.memory_space<vmem>>, vector<8x128xbf16>
    %c0_4 = arith.constant 0 : index
    %c0_5 = arith.constant 0 : index
    %5 = vector.load %arg4[%c0_4, %c0_5] : memref<128x128xbf16, #tpu.memory_space<vmem>>, vector<128x128xbf16>
    %cst = arith.constant dense<0.000000e+00> : vector<8x128xf32>
    %6 = tpu.matmul %4, %5, %cst {dimension_numbers = #tpu.dot_dimension_numbers<[1], [0], [0], [1], [0, 0, 1, 1], [], []>} : vector<8x128xbf16>, vector<128x128xbf16>, vector<8x128xf32> -> vector<8x128xf32>
    %7 = arith.addf %3, %6 : vector<8x128xf32>
    %c0_6 = arith.constant 0 : index
    %c0_7 = arith.constant 0 : index
    %8 = vector.load %arg7[%c0_6, %c0_7] : memref<8x128xf32, #tpu.memory_space<vmem>>, vector<8x128xf32>
    tpu.vector_store %arg7[%c0_6, %c0_7], %7 {strides = array<i32>} : memref<8x128xf32, #tpu.memory_space<vmem>>, vector<8x128xf32>,
    %c0_i32_8 = arith.constant 0 : i32
    %9 = arith.cmpi eq, %arg2, %c0_i32_8 : i32
    %10 = arith.extui %9 : i1 to i32
    %c0_i32_9 = arith.constant 0 : i32
    %11 = arith.cmpi ne, %10, %c0_i32_9 : i32
    scf.if %11 {
      %c0_10 = arith.constant 0 : index
      %c0_11 = arith.constant 0 : index
      %12 = vector.load %arg7[%c0_10, %c0_11] : memref<8x128xf32, #tpu.memory_space<vmem>>, vector<8x128xf32>
      %c0_12 = arith.constant 0 : index
      %c0_13 = arith.constant 0 : index
      %13 = vector.load %arg5[%c0_12, %c0_13] : memref<1x128xf32, #tpu.memory_space<vmem>>, vector<1x128xf32>
      %14 = vector.broadcast %13 : vector<1x128xf32> to vector<8x128xf32>
      %15 = arith.addf %12, %14 : vector<8x128xf32>
      %c0_14 = arith.constant 0 : index
      %c0_15 = arith.constant 0 : index
      %16 = vector.load %arg6[%c0_14, %c0_15] : memref<8x128xf32, #tpu.memory_space<vmem>>, vector<8x128xf32>
      tpu.vector_store %arg6[%c0_14, %c0_15], %15 {strides = array<i32>} : memref<8x128xf32, #tpu.memory_space<vmem>>, vector<8x128xf32>,
    } else {
    }
    return
  }
  func.func @transform_0(%arg0: i32, %arg1: i32, %arg2: i32) -> (i32, i32) {
    %c0_i32 = arith.constant 0 : i32
    return %arg0, %arg2 : i32, i32
  }
  func.func @transform_1(%arg0: i32, %arg1: i32, %arg2: i32) -> (i32, i32) {
    %c0_i32 = arith.constant 0 : i32
    return %arg2, %arg1 : i32, i32
  }
  func.func @transform_2(%arg0: i32, %arg1: i32, %arg2: i32) -> (i32, i32) {
    %c0_i32 = arith.constant 0 : i32
    %c0_i32_0 = arith.constant 0 : i32
    return %c0_i32, %arg1 : i32, i32
  }
  func.func @transform_3(%arg0: i32, %arg1: i32, %arg2: i32) -> (i32, i32) {
    %c0_i32 = arith.constant 0 : i32
    return %arg0, %arg1 : i32, i32
  }
}

</mosaic_0001>

<bundles_post_ra>
// kernel: net_forward.14
= control target key start
LH: loop header
LB: loop body
LE: loop exit
PB: predicated region body
PF: predicated region fallthrough
CT: control target
= control target key end

     0   :  { %s708_s24 = smov 0   ;;  %s757_s0 = inlined_call_operand.vmem [shape: bf16[2,8,32], index: 0, kind: input, shape index: {}]   ;;  %s758_s1 = inlined_call_operand.vmem [shape: bf16[2,8,32], index: 1, kind: input, shape index: {}]   ;;  %s759_s2 = inlined_call_operand.vmem [shape: f32[2,32], index: 2, kind: input, shape index: {}]   ;;  %s760_s3 = inlined_call_operand.vmem [shape: f32[1,16], index: 3, kind: input, shape index: {}]   ;;  %s761_s4 = inlined_call_operand.vmem [shape: f32[2,1,8], index: 4, kind: input, shape index: {}]   ;;  %s762_s5 = inlined_call_operand.vmem [shape: f32[2,1,16], index: 5, kind: input, shape index: {}]   ;;  %s763_s6 = inlined_call_operand.vmem [shape: bf16[2,8,16], index: 6, kind: output, shape index: {0}]   ;;  %s764_s7 = inlined_call_operand.vmem [shape: f32[2,2,8], index: 7, kind: output, shape index: {1}]  }
   0x1 LB: > { %s615_s25 = sadd.s32 4294967295, %s663_s24   ;;  %p619_p0 = scmp.ge.s32.totalorder %s663_s24, 1  ;;  %s663_s24 = sphi %s708_s24, %s18_s24  }
   0x2   : > { %p264_p1 = scmp.lt.s32.totalorder %s663_s24, 3 }
   0x4   : > { %p265_p2 = pnand %p619_p0, %p264_p1 }
   0x5   : > { %p308_p3 = scmp.lt.s32.totalorder (!%p265_p2), %s615_s25, 1 }
   0x6   : > { %268 = sbr.rel (%p265_p2) target bundleno = 684 (0x2ac), region = 44 }
   0xb   : > { %v335_v0 = vlaneseq  ;;  %v665_v1 = vmov 0.0   ;;  %s766_s25 = smov (!%p308_p3, %s615_s25), 1  ;;  %vm666_vm0 = vmmov 0   ;;  %v334_v3 = vld [vmem:[%s759_s2] sm:$0x3]  ;;  %vm349_vm1 = vcmask 1043456  }
   0xc   : > { %632 = vmatprep.subr.bf16.mxu0 %v665_v1  ;;  %634 = vmatprep.mubr.msk.bf16.mxu0 %vm666_vm0, %v665_v1  ;;  %s722_s28 = sshll.u32 %s766_s25, 2  ;;  %s318_s8 = scalar_lea.vmem %s761_s4, %s766_s25  ;;  %vm360_vm2 = vcmask 261120   ;;  %v624_v22 = vld [vmem:[%s760_s3] ss:$0 sm:$0xff]  ;;  %vm462_vm4 = vcmask 130112   ;;  %vm424_vm5 = vcmask 64512  }
   0xd   : > { %v336_v2 = vshrl.u32 %v335_v0, 7  ;;  %s315_s11 = scalar_lea.vmem %s758_s1, %s722_s28  ;;  %v626_v6 = vld [vmem:[%s318_s8] ss:$0 sm:$0xff]  ;;  %s311_s14 = scalar_lea.vmem %s757_s0, %s722_s28  ;;  %v430_v31 = vand.u32 127, %v335_v0  ;;  %vm436_vm6 = vcmask 57344   ;;  %vm460_vm7 = vcmask 60416  }
   0xe   : > { %v332_v7 = vld [vmem:[%s315_s11] sm:$0xf]  ;;  %413 = vbcast.lane.b32.xlu0 %v626_v6, 256  ;;  %s321_s17 = scalar_lea.vmem %s762_s5, %s766_s25  ;;  %s623_s20 = sshll.u32 %s766_s25, 1  ;;  %vm499_vm8 = vcmask 126016  }
   0xf   : > { %v337_v4 = vsub.s32 0, %v336_v2  ;;  %v343_v5 = vsub.s32 1, %v336_v2  ;;  %v333_v10 = vunpack.c.l.bf16 %v332_v7  ;;  %v331_v18 = vld [vmem:[%s311_s14] sm:$0xf]  ;;  %v433_v32 = vsub.s32 %v430_v31, %v336_v2  ;;  %s329_s23 = scalar_lea.vmem %s764_s7, %s623_s20  ;;  %s667_s25 = smov 120  }
  0x10   : > { %v627_v19 = vld [vmem:[%s321_s17] ss:$0 sm:$0xff]  ;;  %s325_s29 = scalar_lea.vmem %s763_s6, %s722_s28 }
  0x11   : > { %v338_v8 = vrot.slane %v334_v3, %v337_v4  ;;  %v344_v9 = vrot.slane %v334_v3, %v343_v5 }
  0x13   : > { %v339_v11 = vmul.f32 %v338_v8, %v333_v10  ;;  %v345_v12 = vmul.f32 %v344_v9, %v333_v10 }
  0x15   : > { %v340_v13 = vpack.c.bf16 %v339_v11, %v339_v11  ;;  %v346_v14 = vpack.c.bf16 %v345_v12, %v345_v12 }
  0x17   : > { %v348_v15 = vrot.slane %v346_v14, 4 }
  0x19   : > { %v352_v16 = vsel %vm349_vm1, %v340_v13, %v348_v15 }
  0x1a   : > { %v364_v17 = vsel %vm360_vm2, %v352_v16, 0 }
  0x1b   : > { %633 = vmatpush3.bf16.xpose.msra.mxu0 %v364_v17 }
  0x22   : > { %635 = vmatmul.mubr.msk.bf16.vlgmr.msra.gmra.mxu0 %vm360_vm2, %v331_v18 }
  0x80   : > { %v414_v20 = vpop.permute.xlu0 %413 }
  0x81   : > { %v421_v21 = vmul.f32 %v627_v19, %v414_v20 }
  0x83   : > { %vm422_vm3 = vcmp.gt.f32.partialorder %v421_v21, 0.0 }
  0xe2   : > { %v400_v23 = vpop.f32.mrf.mxu0 }
  0xe3   : > { %v401_v24 = vadd.f32 %v624_v22, %v400_v23 }
  0xe4   : > { %v636_v25 = vpop.f32.mrf.mxu0 }
  0xe5   : > { %v423_v26 = vsel %vm422_vm3, %v401_v24, -1e+30 }
  0xe6   : > { %v403_v27 = vpop.f32.mrf.mxu0  ;;  %v463_v28 = vsel %vm462_vm4, %v423_v26, -inf  ;;  %v425_v29 = vsel %vm424_vm5, %v423_v26, -inf }
  0xe7   : > { %464 = vmax.xlane.f32.xlu0 %v463_v28  ;;  %426 = vmax.xlane.f32.xlu1 %v425_v29 }
  0xe8   : > { %v637_v30 = vpop.f32.mrf.mxu0 }
 0x170   : > { %v465_v33 = vpop.xlane.xlu0 %464  ;;  %v427_v34 = vpop.xlane.xlu1 %426 }
 0x171   : > { %v470_v35 = vrot.slane %v465_v33, %v433_v32  ;;  %v473_v36 = vrot.slane %v465_v33, 4  ;;  %v434_v37 = vrot.slane %v427_v34, %v433_v32  ;;  %v438_v45 = vrot.slane %v427_v34, 4 }
 0x173   : > { %472 = vst.msk [vmem:[%s329_s23 + $0x1] sm:$0x1] %vm436_vm6, %v470_v35  ;;  %v474_v38 = vmax.f32 %v465_v33, %v473_v36  ;;  %437 = vst.msk [vmem:[%s329_s23] sm:$0x1] %vm436_vm6, %v434_v37  ;;  %v439_v46 = vmax.f32 %v427_v34, %v438_v45 }
 0x175   : > { %v475_v39 = vrot.slane %v474_v38, 2  ;;  %v440_v47 = vrot.slane %v439_v46, 2 }
 0x177   : > { %v476_v40 = vmax.f32 %v474_v38, %v475_v39  ;;  %v441_v49 = vmax.f32 %v439_v46, %v440_v47 }
 0x179   : > { %v477_v41 = vrot.slane %v476_v40, 1  ;;  %v442_v50 = vrot.slane %v441_v49, 1 }
 0x17b   : > { %v478_v42 = vmax.f32 %v476_v40, %v477_v41  ;;  %v443_v51 = vmax.f32 %v441_v49, %v442_v50 }
 0x17d   : > { %v479_v43 = vsub.f32 %v423_v26, %v478_v42  ;;  %v444_v52 = vsub.f32 %v423_v26, %v443_v51 }
 0x17f   : > { %v480_v44 = vmul.f32 1.442695, %v479_v43  ;;  %v445_v53 = vmul.f32 1.442695, %v444_v52 }
 0x181   : > { %649 = vpow2.f32 %v480_v44 }
 0x182   : > { %651 = vpow2.f32 %v445_v53 }
 0x18e   : > { %v650_v48 = vpop.eup %649 }
 0x18f   : > { %483 = vrot.lane.b32.xlu1 %v650_v48, %s667_s25  ;;  %v652_v54 = vpop.eup %651 }
 0x190   : > { %v447_v55 = vsel %vm424_vm5, %v652_v54, 0.0 }
 0x1b3   : > { %448 = vadd.xlane.f32.xlu1 %v447_v55 }
 0x201   : > { %v484_v56 = vpop.permute.xlu1 %483 }
 0x202   : > { %v486_v57 = vsel %vm424_vm5, %v484_v56, 0.0 }
 0x203   : > { %487 = vadd.xlane.f32.xlu0 %v486_v57 }
 0x23c   : > { %v449_v58 = vpop.xlane.xlu1 %448 }
 0x23d   : > { %v450_v59 = vrot.slane %v449_v58, 4 }
 0x23f   : > { %v451_v60 = vadd.f32 %v450_v59, %v449_v58 }
 0x241   : > { %v452_v61 = vrot.slane %v451_v60, 2 }
 0x243   : > { %v453_v62 = vadd.f32 %v452_v61, %v451_v60 }
 0x245   : > { %v454_v63 = vrot.slane %v453_v62, 1 }
 0x247   : > { %v455_v0 = vadd.f32 %v454_v63, %v453_v62 }
 0x249   : > { %653 = vrcp.f32 %v455_v0 }
 0x256   : > { %v654_v1 = vpop.eup %653 }
 0x257   : > { %v458_v2 = vmul.f32 %v654_v1, %v652_v54 }
 0x259   : > { %v459_v3 = vpack.c.bf16 %v458_v2, %v458_v2 }
 0x25b   : > { %461 = vst.msk [vmem:[%s325_s29] sm:$0xf] %vm460_vm7, %v459_v3 }
 0x28c   : > { %v488_v4 = vpop.xlane.xlu0 %487 }
 0x28d   : > { %v489_v5 = vrot.slane %v488_v4, 4 }
 0x28f   : > { %v490_v6 = vadd.f32 %v489_v5, %v488_v4 }
 0x291   : > { %v491_v7 = vrot.slane %v490_v6, 2 }
 0x293   : > { %v492_v8 = vadd.f32 %v491_v7, %v490_v6 }
 0x295   : > { %v493_v9 = vrot.slane %v492_v8, 1 }
 0x297   : > { %v494_v10 = vadd.f32 %v493_v9, %v492_v8 }
 0x299   : > { %655 = vrcp.f32 %v494_v10 }
 0x2a6   : > { %v656_v11 = vpop.eup %655 }
 0x2a7   : > { %v497_v12 = vmul.f32 %v656_v11, %v650_v48 }
 0x2a9   : > { %v498_v13 = vpack.c.bf16 %v497_v12, %v497_v12 }
 0x2ab   : > { %500 = vst.msk [vmem:[%s325_s29] sm:$0xf] %vm499_vm8, %v498_v13 }
 0x2ac PF: > { %s18_s24 = sadd.s32 1, %s663_s24  }
 0x2ad   : > { %p15_p4 = scmp.ge.s32.totalorder %s18_s24, 4  }
 0x2af   :  { %17 = sbr.rel (!%p15_p4) target bundleno = 1 (0x1), region = 95 }

// kernel: net_forward.11
= control target key start
LH: loop header
LB: loop body
LE: loop exit
PB: predicated region body
PF: predicated region fallthrough
CT: control target
= control target key end

     0   :  { %v210_v0 = vmov 0.0   ;;  %vm211_vm0 = vmmov 0   ;;  %s268_s1 = inlined_call_operand.vmem [shape: bf16[128,128], index: 1, kind: input, shape index: {}]   ;;  %s269_s0 = inlined_call_operand.vmem [shape: bf16[16,128], index: 0, kind: input, shape index: {}]   ;;  %s270_s2 = inlined_call_operand.vmem [shape: f32[1,128], index: 2, kind: input, shape index: {}]   ;;  %s271_s3 = inlined_call_operand.vmem [shape: f32[16,128], index: 3, kind: output, shape index: {}]  }
   0x1   :  { %179 = vmatprep.subr.bf16.mxu0 %v210_v0  ;;  %v201_v1 = vld [vmem:[%s268_s1 + $0x38] sm:$0xff]   ;;  %195 = vmatprep.mubr.msk.bf16.mxu0 %vm211_vm0, %v210_v0  ;;  %v202_v2 = vld [vmem:[%s268_s1 + $0x30] sm:$0xff]   ;;  %v203_v3 = vld [vmem:[%s268_s1 + $0x28] sm:$0xff]  }
   0x2   :  { %180 = vmatpush3.bf16.msra.mxu0 %v201_v1  ;;  %v204_v4 = vld [vmem:[%s268_s1 + $0x20] sm:$0xff]   ;;  %v205_v5 = vld [vmem:[%s268_s1 + $0x18] sm:$0xff]   ;;  %v206_v6 = vld [vmem:[%s268_s1 + $0x10] sm:$0xff]  }
   0x3   :  { %181 = vmatprep.subr.bf16.mxu0 %v210_v0  ;;  %v207_v7 = vld [vmem:[%s268_s1 + $0x8] sm:$0xff]   ;;  %v208_v8 = vld [vmem:[%s268_s1] sm:$0xff]  }
   0x4   :  { %v209_v9 = vld [vmem:[%s269_s0] sm:$0xff]  }
   0x5   :  { %v169_v10 = vld [vmem:[%s270_s2] ss:$0 sm:$0xff] }
   0x6   :  { %182 = vmatpush3.bf16.msra.mxu0 %v202_v2 }
   0x7   :  { %183 = vmatprep.subr.bf16.mxu0 %v210_v0 }
   0xa   :  { %184 = vmatpush3.bf16.msra.mxu0 %v203_v3 }
   0xb   :  { %185 = vmatprep.subr.bf16.mxu0 %v210_v0 }
   0xe   :  { %186 = vmatpush3.bf16.msra.mxu0 %v204_v4 }
   0xf   :  { %187 = vmatprep.subr.bf16.mxu0 %v210_v0 }
  0x12   :  { %188 = vmatpush3.bf16.msra.mxu0 %v205_v5 }
  0x13   :  { %189 = vmatprep.subr.bf16.mxu0 %v210_v0 }
  0x16   :  { %190 = vmatpush3.bf16.msra.mxu0 %v206_v6 }
  0x17   :  { %191 = vmatprep.subr.bf16.mxu0 %v210_v0 }
  0x1a   :  { %192 = vmatpush3.bf16.msra.mxu0 %v207_v7 }
  0x1b   :  { %193 = vmatprep.subr.bf16.mxu0 %v210_v0 }
  0x1e   :  { %194 = vmatpush3.bf16.msra.mxu0 %v208_v8 }
  0x21   :  { %196 = vmatmul.mubr.bf16.vlgmr.msra.gmra.mxu0 %v209_v9 }
  0xe1   :  { %v129_v11 = vpop.f32.mrf.mxu0 }
  0xe2   :  { %v152_v12 = vadd.f32 %v169_v10, %v129_v11 }
  0xe3   :  { %v197_v13 = vpop.f32.mrf.mxu0 }
  0xe4   :  { %154 = vst [vmem:[%s271_s3] sm:$0xff] %v152_v12 }
  0xe5   :  { %v132_v14 = vpop.f32.mrf.mxu0 }
  0xe6   :  { %v153_v15 = vadd.f32 %v169_v10, %v132_v14 }
  0xe7   :  { %v198_v16 = vpop.f32.mrf.mxu0 }
  0xe8   :  { %155 = vst [vmem:[%s271_s3 + $0x8] sm:$0xff] %v153_v15 }

// kernel: net_forward.16
= control target key start
LH: loop header
LB: loop body
LE: loop exit
PB: predicated region body
PF: predicated region fallthrough
CT: control target
= control target key end

     0   :  { %v229_v0 = vmov 0.0   ;;  %vm230_vm0 = vmmov 0   ;;  %s284_s1 = inlined_call_operand.vmem [shape: bf16[128,128], index: 1, kind: input, shape index: {}]   ;;  %s285_s0 = inlined_call_operand.vmem [shape: bf16[16,128], index: 0, kind: input, shape index: {}]   ;;  %s286_s2 = inlined_call_operand.vmem [shape: f32[1,128], index: 2, kind: input, shape index: {}]   ;;  %s287_s3 = inlined_call_operand.vmem [shape: bf16[16,128], index: 3, kind: output, shape index: {}]  }
   0x1   :  { %198 = vmatprep.subr.bf16.mxu0 %v229_v0  ;;  %v220_v1 = vld [vmem:[%s284_s1 + $0x38] sm:$0xff]   ;;  %214 = vmatprep.mubr.msk.bf16.mxu0 %vm230_vm0, %v229_v0  ;;  %v221_v2 = vld [vmem:[%s284_s1 + $0x30] sm:$0xff]   ;;  %v222_v3 = vld [vmem:[%s284_s1 + $0x28] sm:$0xff]  }
   0x2   :  { %199 = vmatpush3.bf16.msra.mxu0 %v220_v1  ;;  %v223_v4 = vld [vmem:[%s284_s1 + $0x20] sm:$0xff]   ;;  %v224_v5 = vld [vmem:[%s284_s1 + $0x18] sm:$0xff]   ;;  %v225_v6 = vld [vmem:[%s284_s1 + $0x10] sm:$0xff]  }
   0x3   :  { %200 = vmatprep.subr.bf16.mxu0 %v229_v0  ;;  %v226_v7 = vld [vmem:[%s284_s1 + $0x8] sm:$0xff]   ;;  %v227_v8 = vld [vmem:[%s284_s1] sm:$0xff]  }
   0x4   :  { %v228_v9 = vld [vmem:[%s285_s0] sm:$0xff]  }
   0x5   :  { %v179_v11 = vld [vmem:[%s286_s2] ss:$0 sm:$0xff] }
   0x6   :  { %201 = vmatpush3.bf16.msra.mxu0 %v221_v2 }
   0x7   :  { %202 = vmatprep.subr.bf16.mxu0 %v229_v0 }
   0xa   :  { %203 = vmatpush3.bf16.msra.mxu0 %v222_v3 }
   0xb   :  { %204 = vmatprep.subr.bf16.mxu0 %v229_v0 }
   0xe   :  { %205 = vmatpush3.bf16.msra.mxu0 %v223_v4 }
   0xf   :  { %206 = vmatprep.subr.bf16.mxu0 %v229_v0 }
  0x12   :  { %207 = vmatpush3.bf16.msra.mxu0 %v224_v5 }
  0x13   :  { %208 = vmatprep.subr.bf16.mxu0 %v229_v0 }
  0x16   :  { %209 = vmatpush3.bf16.msra.mxu0 %v225_v6 }
  0x17   :  { %210 = vmatprep.subr.bf16.mxu0 %v229_v0 }
  0x1a   :  { %211 = vmatpush3.bf16.msra.mxu0 %v226_v7 }
  0x1b   :  { %212 = vmatprep.subr.bf16.mxu0 %v229_v0 }
  0x1e   :  { %213 = vmatpush3.bf16.msra.mxu0 %v227_v8 }
  0x21   :  { %215 = vmatmul.mubr.bf16.vlgmr.msra.gmra.mxu0 %v228_v9 }
  0xe1   :  { %v129_v10 = vpop.f32.mrf.mxu0 }
  0xe2   :  { %v152_v13 = vadd.f32 %v179_v11, %v129_v10 }
  0xe3   :  { %v216_v12 = vpop.f32.mrf.mxu0 }
  0xe4   :  { %v154_v17 = vmax.f32 %v152_v13, 0.0 }
  0xe5   :  { %v132_v14 = vpop.f32.mrf.mxu0 }
  0xe6   :  { %v153_v15 = vadd.f32 %v179_v11, %v132_v14 }
  0xe7   :  { %v217_v16 = vpop.f32.mrf.mxu0 }
  0xe8   :  { %v155_v18 = vmax.f32 %v153_v15, 0.0 }
  0xea   :  { %v187_v19 = vpack.c.bf16 %v155_v18, %v154_v17 }
  0xec   :  { %188 = vst [vmem:[%s287_s3] sm:$0xff] %v187_v19  }

// kernel: net_forward.15
= control target key start
LH: loop header
LB: loop body
LE: loop exit
PB: predicated region body
PF: predicated region fallthrough
CT: control target
= control target key end

     0   :  { %v248_v0 = vmov 0.0   ;;  %vm249_vm0 = vmmov 0   ;;  %v250_v2 = vmov 0   ;;  %s315_s2 = inlined_call_operand.vmem [shape: bf16[128,128], index: 2, kind: input, shape index: {}]   ;;  %s316_s1 = inlined_call_operand.vmem [shape: f32[16,1], index: 1, kind: input, shape index: {}]   ;;  %s317_s0 = inlined_call_operand.vmem [shape: bf16[16,128], index: 0, kind: input, shape index: {}]   ;;  %s318_s3 = inlined_call_operand.vmem [shape: f32[1,128], index: 3, kind: input, shape index: {}]   ;;  %s319_s4 = inlined_call_operand.vmem [shape: bf16[16,128], index: 4, kind: output, shape index: {}]  }
   0x1   :  { %215 = vmatprep.subr.bf16.mxu0 %v248_v0  ;;  %v239_v1 = vld [vmem:[%s315_s2 + $0x38] sm:$0xff]   ;;  %231 = vmatprep.mubr.msk.bf16.mxu0 %vm249_vm0, %v248_v0  ;;  %v240_v3 = vld [vmem:[%s315_s2 + $0x30] sm:$0xff]   ;;  %v241_v4 = vld [vmem:[%s315_s2 + $0x28] sm:$0xff]  }
   0x2   :  { %238 = vset.pattern.permute.xlu0 %v250_v2  ;;  %216 = vmatpush3.bf16.msra.mxu0 %v239_v1  ;;  %v148_v5 = vld [vmem:[%s316_s1] sm:$0xff]  ;;  %v149_v7 = vld [vmem:[%s316_s1 + $0x8] sm:$0xff]  ;;  %v243_v8 = vld [vmem:[%s315_s2 + $0x18] sm:$0xff]  }
   0x3   :  { %217 = vmatprep.subr.bf16.mxu0 %v248_v0  ;;  %v242_v6 = vld [vmem:[%s315_s2 + $0x20] sm:$0xff]   ;;  %152 = vperm.xlu0 %238, %v148_v5   ;;  %v244_v9 = vld [vmem:[%s315_s2 + $0x10] sm:$0xff]   ;;  %v245_v10 = vld [vmem:[%s315_s2 + $0x8] sm:$0xff]  }
   0x4   :  { %v246_v11 = vld [vmem:[%s315_s2] sm:$0xff]  }
   0x5   :  { %v247_v12 = vld [vmem:[%s317_s0] sm:$0xff]  }
   0x6   :  { %218 = vmatpush3.bf16.msra.mxu0 %v240_v3  ;;  %v196_v16 = vld [vmem:[%s318_s3] ss:$0 sm:$0xff] }
   0x7   :  { %219 = vmatprep.subr.bf16.mxu0 %v248_v0  ;;  %157 = vperm.xlu0 %238, %v149_v7  }
   0xa   :  { %220 = vmatpush3.bf16.msra.mxu0 %v241_v4 }
   0xb   :  { %221 = vmatprep.subr.bf16.mxu0 %v248_v0 }
   0xe   :  { %222 = vmatpush3.bf16.msra.mxu0 %v242_v6 }
   0xf   :  { %223 = vmatprep.subr.bf16.mxu0 %v248_v0 }
  0x12   :  { %224 = vmatpush3.bf16.msra.mxu0 %v243_v8 }
  0x13   :  { %225 = vmatprep.subr.bf16.mxu0 %v248_v0 }
  0x16   :  { %226 = vmatpush3.bf16.msra.mxu0 %v244_v9 }
  0x17   :  { %227 = vmatprep.subr.bf16.mxu0 %v248_v0 }
  0x1a   :  { %228 = vmatpush3.bf16.msra.mxu0 %v245_v10 }
  0x1b   :  { %229 = vmatprep.subr.bf16.mxu0 %v248_v0 }
  0x1e   :  { %230 = vmatpush3.bf16.msra.mxu0 %v246_v11 }
  0x21   :  { %232 = vmatmul.mubr.bf16.vlgmr.msra.gmra.mxu0 %v247_v12 }
  0x7e   :  { %v153_v13 = vpop.permute.xlu0 %152 }
  0x82   :  { %v158_v18 = vpop.permute.xlu0 %157 }
  0xe1   :  { %v132_v14 = vpop.f32.mrf.mxu0 }
  0xe2   :  { %v160_v15 = vmul.f32 %v153_v13, %v132_v14 }
  0xe3   :  { %v233_v17 = vpop.f32.mrf.mxu0 }
  0xe4   :  { %v169_v20 = vadd.f32 %v196_v16, %v160_v15 }
  0xe5   :  { %v135_v19 = vpop.f32.mrf.mxu0 }
  0xe6   :  { %v161_v21 = vmul.f32 %v158_v18, %v135_v19  ;;  %v171_v24 = vmax.f32 %v169_v20, 0.0 }
  0xe7   :  { %v234_v22 = vpop.f32.mrf.mxu0 }
  0xe8   :  { %v170_v23 = vadd.f32 %v196_v16, %v161_v21 }
  0xea   :  { %v172_v25 = vmax.f32 %v170_v23, 0.0 }
  0xec   :  { %v204_v26 = vpack.c.bf16 %v172_v25, %v171_v24 }
  0xee   :  { %205 = vst [vmem:[%s319_s4] sm:$0xff] %v204_v26  }

// kernel: net_forward.17
= control target key start
LH: loop header
LB: loop body
LE: loop exit
PB: predicated region body
PF: predicated region fallthrough
CT: control target
= control target key end

     0   :  { %s550_s18 = smov 0   ;;  %s586_s0 = inlined_call_operand.vmem [shape: bf16[2,8,16], index: 0, kind: input, shape index: {}]   ;;  %s587_s1 = inlined_call_operand.vmem [shape: bf16[2,2,8,32], index: 1, kind: input, shape index: {}]   ;;  %s588_s2 = inlined_call_operand.vmem [shape: bf16[2,8,32], index: 2, kind: input, shape index: {}]   ;;  %s589_s3 = inlined_call_operand.vmem [shape: bf16[32,32], index: 3, kind: input, shape index: {}]   ;;  %s590_s4 = inlined_call_operand.vmem [shape: f32[1,32], index: 4, kind: input, shape index: {}]   ;;  %s591_s5 = inlined_call_operand.vmem [shape: f32[2,1,32], index: 5, kind: output, shape index: {}]  }
   0x1 LB: > { %s464_s19 = sadd.s32 4294967295, %s516_s18   ;;  %p468_p0 = scmp.ge.s32.totalorder %s516_s18, 1  ;;  %s516_s18 = sphi %s550_s18, %s15_s18  }
   0x2   : > { %p204_p1 = scmp.lt.s32.totalorder %s516_s18, 3 }
   0x4   : > { %p205_p2 = pnand %p468_p0, %p204_p1 }
   0x5   : > { %p237_p3 = scmp.lt.s32.totalorder (!%p205_p2), %s464_s19, 1 }
   0x6   : > { %208 = sbr.rel (%p205_p2) target bundleno = 523 (0x20b), region = 40 }
   0xb   : > { %v518_v0 = vmov 0.0   ;;  %vm519_vm0 = vmmov 0   ;;  %s593_s19 = smov (!%p237_p3, %s464_s19), 1  ;;  %vm276_vm1 = vcmask 1043456   ;;  %vm272_vm2 = vcmask 64512   ;;  %v508_v5 = vld [vmem:[%s589_s3 + $0x8] sm:$0xff]  }
   0xc   : > { %483 = vmatprep.subr.bf16.mxu0 %v518_v0  ;;  %485 = vmatprep.mubr.msk.bf16.mxu0 %vm519_vm0, %v518_v0  ;;  %s469_s20 = sshll.u32 %s593_s19, 2  ;;  %v509_v6 = vld [vmem:[%s589_s3] sm:$0xff]   ;;  %vm322_vm3 = vcmask 261120   ;;  %s251_s13 = scalar_lea.vmem %s591_s5, %s593_s19  ;;  %vm391_vm4 = vcmask 253952  }
   0xd   : > { %489 = vmatprep.subr.bf16.mxu1 %v518_v0  ;;  %493 = vmatprep.mubr.msk.bf16.mxu1 %vm519_vm0, %v518_v0  ;;  %s240_s23 = scalar_lea.vmem %s586_s0, %s469_s20  ;;  %s244_s26 = scalar_lea.vmem %s587_s1, %s469_s20  ;;  %v335_v22 = vld [vmem:[%s590_s4] sm:$0x1] }
   0xe   : > { %v253_v1 = vld [vmem:[%s240_s23] sm:$0xf]  ;;  %490 = vmatpush3.bf16.msra.mxu1 %v508_v5  ;;  %s248_s8 = scalar_lea.vmem %s588_s2, %s469_s20 }
   0xf   : > { %v254_v2 = vld [vmem:[%s244_s26] sm:$0xf]  ;;  %256 = vxpose.xlu0.c.b16.start.end [1/1] (short) (narrow) %v253_v1, 16  ;;  %491 = vmatprep.subr.bf16.mxu1 %v518_v0 }
  0x10   : > { %v278_v3 = vsel %vm276_vm1, %v254_v2, 0  ;;  %v255_v7 = vld [vmem:[%s248_s8] sm:$0xf] }
  0x11   : > { %484 = vmatpush3.bf16.msra.mxu0 %v278_v3  ;;  %v320_v8 = vunpack.c.l.bf16 %v255_v7 }
  0x12   : > { %492 = vmatpush3.bf16.msra.mxu1 %v509_v6 }
  0x71   : > { %v264_v4 = vpop.trf.xlu0 }
  0x72   : > { %486 = vmatmul.mubr.msk.bf16.vlgmr.msra.gmra.mxu0 %vm272_vm2, %v264_v4 }
 0x132   : > { %v314_v9 = vpop.f32.mrf.mxu0 }
 0x133   : > { %v321_v10 = vmul.f32 %v320_v8, %v314_v9 }
 0x134   : > { %v487_v11 = vpop.f32.mrf.mxu0 }
 0x135   : > { %v323_v12 = vsel %vm322_vm3, %v321_v10, 0.0 }
 0x136   : > { %v324_v13 = vrot.slane %v323_v12, 4  ;;  %v317_v14 = vpop.f32.mrf.mxu0 }
 0x138   : > { %v325_v15 = vadd.f32 %v324_v13, %v323_v12  ;;  %v488_v16 = vpop.f32.mrf.mxu0 }
 0x13a   : > { %v326_v17 = vrot.slane %v325_v15, 2 }
 0x13c   : > { %v327_v18 = vadd.f32 %v326_v17, %v325_v15 }
 0x13e   : > { %v328_v19 = vrot.slane %v327_v18, 1 }
 0x140   : > { %v329_v20 = vadd.f32 %v328_v19, %v327_v18 }
 0x142   : > { %v330_v21 = vpack.c.bf16 %v329_v20, %v329_v20 }
 0x144   : > { %494 = vmatmul.mubr.msk.bf16.vlgmr.msra.gmra.mxu1 %vm322_vm3, %v330_v21 }
 0x204   : > { %v385_v23 = vpop.f32.mrf.mxu1 }
 0x205   : > { %v386_v24 = vadd.f32 %v385_v23, %v335_v22 }
 0x206   : > { %v495_v25 = vpop.f32.mrf.mxu1 }
 0x207   : > { %392 = vst.msk [vmem:[%s251_s13] sm:$0x1] %vm391_vm4, %v386_v24 }
 0x208   : > { %v388_v26 = vpop.f32.mrf.mxu1 }
 0x20a   : > { %v496_v27 = vpop.f32.mrf.mxu1 }
 0x20b PF: > { %s15_s18 = sadd.s32 1, %s516_s18  }
 0x20c   : > { %p12_p4 = scmp.ge.s32.totalorder %s15_s18, 4  }
 0x20e   :  { %14 = sbr.rel (!%p12_p4) target bundleno = 1 (0x1), region = 76 }

// kernel: net_forward.19
= control target key start
LH: loop header
LB: loop body
LE: loop exit
PB: predicated region body
PF: predicated region fallthrough
CT: control target
= control target key end

     0   :  { %s567_s18 = smov 0   ;;  %s603_s0 = inlined_call_operand.vmem [shape: bf16[2,8,16], index: 0, kind: input, shape index: {}]   ;;  %s604_s1 = inlined_call_operand.vmem [shape: bf16[2,2,8,32], index: 1, kind: input, shape index: {}]   ;;  %s605_s2 = inlined_call_operand.vmem [shape: bf16[2,8,32], index: 2, kind: input, shape index: {}]   ;;  %s606_s3 = inlined_call_operand.vmem [shape: bf16[32,32], index: 3, kind: input, shape index: {}]   ;;  %s607_s4 = inlined_call_operand.vmem [shape: f32[1,32], index: 4, kind: input, shape index: {}]   ;;  %s608_s5 = inlined_call_operand.vmem [shape: f32[2,1,32], index: 5, kind: output, shape index: {}]  }
   0x1 LB: > { %s476_s19 = sadd.s32 4294967295, %s532_s18   ;;  %p480_p0 = scmp.ge.s32.totalorder %s532_s18, 1  ;;  %s532_s18 = sphi %s567_s18, %s15_s18  }
   0x2   : > { %p205_p1 = scmp.lt.s32.totalorder %s532_s18, 3 }
   0x4   : > { %p206_p2 = pnand %p480_p0, %p205_p1 }
   0x5   : > { %p239_p3 = scmp.lt.s32.totalorder (!%p206_p2), %s476_s19, 1  ;;  %s536_s27 = smov (!%p206_p2), 120  }
   0x6   : > { %209 = sbr.rel (%p206_p2) target bundleno = 638 (0x27e), region = 40 }
   0xb   : > { %v534_v0 = vmov 0.0   ;;  %vm535_vm0 = vmmov 0   ;;  %s610_s19 = smov (!%p239_p3, %s476_s19), 1  ;;  %vm285_vm1 = vcmask 1043456   ;;  %vm281_vm2 = vcmask 64512   ;;  %v524_v6 = vld [vmem:[%s606_s3 + $0x8] sm:$0xff]  }
   0xc   : > { %497 = vmatprep.subr.bf16.mxu0 %v534_v0  ;;  %499 = vmatprep.mubr.msk.bf16.mxu0 %vm535_vm0, %v534_v0  ;;  %s481_s20 = sshll.u32 %s610_s19, 2  ;;  %v525_v7 = vld [vmem:[%s606_s3] sm:$0xff]   ;;  %vm331_vm3 = vcmask 261120   ;;  %s254_s14 = scalar_lea.vmem %s608_s5, %s610_s19  ;;  %vm400_vm4 = vcmask 253952  }
   0xd   : > { %503 = vmatprep.subr.bf16.mxu1 %v534_v0  ;;  %507 = vmatprep.mubr.msk.bf16.mxu1 %vm535_vm0, %v534_v0  ;;  %s242_s23 = scalar_lea.vmem %s603_s0, %s481_s20  ;;  %s437_s26 = scalar_lea.vmem %s604_s1, %s481_s20  ;;  %v344_v23 = vld [vmem:[%s607_s4] sm:$0x1] }
   0xe   : > { %v523_v1 = vld [vmem:[%s242_s23] ss:$0 sps:$4 sm:$0xff]   ;;  %v484_v2 = vld [vmem:[%s437_s26 + $0x8] sm:$0xf]  ;;  %504 = vmatpush3.bf16.msra.mxu1 %v524_v6  ;;  %s251_s9 = scalar_lea.vmem %s605_s2, %s481_s20 }
   0xf   : > { %v287_v3 = vsel %vm285_vm1, %v484_v2, 0  ;;  %262 = vrot.lane.b32.xlu0 %v523_v1, %s536_s27  ;;  %505 = vmatprep.subr.bf16.mxu1 %v534_v0  ;;  %v258_v8 = vld [vmem:[%s251_s9] sm:$0xf] }
  0x10   : > { %498 = vmatpush3.bf16.msra.mxu0 %v287_v3  ;;  %v329_v9 = vunpack.c.l.bf16 %v258_v8 }
  0x12   : > { %506 = vmatpush3.bf16.msra.mxu1 %v525_v7 }
  0x81   : > { %v263_v4 = vpop.permute.xlu0 %262 }
  0x82   : > { %265 = vxpose.xlu0.c.b16.start.end [1/1] (short) (narrow) %v263_v4, 16 }
  0xe4   : > { %v273_v5 = vpop.trf.xlu0 }
  0xe5   : > { %500 = vmatmul.mubr.msk.bf16.vlgmr.msra.gmra.mxu0 %vm281_vm2, %v273_v5 }
 0x1a5   : > { %v323_v10 = vpop.f32.mrf.mxu0 }
 0x1a6   : > { %v330_v11 = vmul.f32 %v329_v9, %v323_v10 }
 0x1a7   : > { %v501_v12 = vpop.f32.mrf.mxu0 }
 0x1a8   : > { %v332_v13 = vsel %vm331_vm3, %v330_v11, 0.0 }
 0x1a9   : > { %v333_v14 = vrot.slane %v332_v13, 4  ;;  %v326_v15 = vpop.f32.mrf.mxu0 }
 0x1ab   : > { %v334_v16 = vadd.f32 %v333_v14, %v332_v13  ;;  %v502_v17 = vpop.f32.mrf.mxu0 }
 0x1ad   : > { %v335_v18 = vrot.slane %v334_v16, 2 }
 0x1af   : > { %v336_v19 = vadd.f32 %v335_v18, %v334_v16 }
 0x1b1   : > { %v337_v20 = vrot.slane %v336_v19, 1 }
 0x1b3   : > { %v338_v21 = vadd.f32 %v337_v20, %v336_v19 }
 0x1b5   : > { %v339_v22 = vpack.c.bf16 %v338_v21, %v338_v21 }
 0x1b7   : > { %508 = vmatmul.mubr.msk.bf16.vlgmr.msra.gmra.mxu1 %vm331_vm3, %v339_v22 }
 0x277   : > { %v394_v24 = vpop.f32.mrf.mxu1 }
 0x278   : > { %v395_v25 = vadd.f32 %v394_v24, %v344_v23 }
 0x279   : > { %v509_v26 = vpop.f32.mrf.mxu1 }
 0x27a   : > { %401 = vst.msk [vmem:[%s254_s14] sm:$0x1] %vm400_vm4, %v395_v25 }
 0x27b   : > { %v397_v27 = vpop.f32.mrf.mxu1 }
 0x27d   : > { %v510_v28 = vpop.f32.mrf.mxu1 }
 0x27e PF: > { %s15_s18 = sadd.s32 1, %s532_s18  }
 0x27f   : > { %p12_p4 = scmp.ge.s32.totalorder %s15_s18, 4  }
 0x281   :  { %14 = sbr.rel (!%p12_p4) target bundleno = 1 (0x1), region = 76 }

// kernel: net_forward.20
= control target key start
LH: loop header
LB: loop body
LE: loop exit
PB: predicated region body
PF: predicated region fallthrough
CT: control target
= control target key end

     0   :  { %v194_v0 = vmov 0.0   ;;  %vm195_vm0 = vmmov 0   ;;  %s249_s1 = inlined_call_operand.vmem [shape: bf16[128,128], index: 1, kind: input, shape index: {}]   ;;  %s250_s0 = inlined_call_operand.vmem [shape: bf16[8,128], index: 0, kind: input, shape index: {}]   ;;  %s251_s2 = inlined_call_operand.vmem [shape: f32[1,128], index: 2, kind: input, shape index: {}]   ;;  %s252_s3 = inlined_call_operand.vmem [shape: f32[8,128], index: 3, kind: output, shape index: {}]  }
   0x1   :  { %164 = vmatprep.subr.bf16.mxu0 %v194_v0  ;;  %v186_v1 = vld [vmem:[%s249_s1 + $0x38] sm:$0xff]   ;;  %180 = vmatprep.mubr.msk.bf16.mxu0 %vm195_vm0, %v194_v0  ;;  %v187_v2 = vld [vmem:[%s249_s1 + $0x30] sm:$0xff]   ;;  %v188_v3 = vld [vmem:[%s249_s1 + $0x28] sm:$0xff]  }
   0x2   :  { %165 = vmatpush3.bf16.msra.mxu0 %v186_v1  ;;  %v189_v4 = vld [vmem:[%s249_s1 + $0x20] sm:$0xff]   ;;  %v190_v5 = vld [vmem:[%s249_s1 + $0x18] sm:$0xff]   ;;  %v191_v6 = vld [vmem:[%s249_s1 + $0x10] sm:$0xff]  }
   0x3   :  { %166 = vmatprep.subr.bf16.mxu0 %v194_v0  ;;  %v192_v7 = vld [vmem:[%s249_s1 + $0x8] sm:$0xff]   ;;  %v193_v8 = vld [vmem:[%s249_s1] sm:$0xff]  }
   0x4   :  { %v21_v9 = vld [vmem:[%s250_s0] sm:$0xf] }
   0x5   :  { %v154_v10 = vld [vmem:[%s251_s2] ss:$0 sm:$0xff] }
   0x6   :  { %167 = vmatpush3.bf16.msra.mxu0 %v187_v2 }
   0x7   :  { %168 = vmatprep.subr.bf16.mxu0 %v194_v0 }
   0xa   :  { %169 = vmatpush3.bf16.msra.mxu0 %v188_v3 }
   0xb   :  { %170 = vmatprep.subr.bf16.mxu0 %v194_v0 }
   0xe   :  { %171 = vmatpush3.bf16.msra.mxu0 %v189_v4 }
   0xf   :  { %172 = vmatprep.subr.bf16.mxu0 %v194_v0 }
  0x12   :  { %173 = vmatpush3.bf16.msra.mxu0 %v190_v5 }
  0x13   :  { %174 = vmatprep.subr.bf16.mxu0 %v194_v0 }
  0x16   :  { %175 = vmatpush3.bf16.msra.mxu0 %v191_v6 }
  0x17   :  { %176 = vmatprep.subr.bf16.mxu0 %v194_v0 }
  0x1a   :  { %177 = vmatpush3.bf16.msra.mxu0 %v192_v7 }
  0x1b   :  { %178 = vmatprep.subr.bf16.mxu0 %v194_v0 }
  0x1e   :  { %179 = vmatpush3.bf16.msra.mxu0 %v193_v8 }
  0x21   :  { %181 = vmatmul.mubr.bf16.vlgmr.msra.gmra.mxu0 %v21_v9 }
  0xe1   :  { %v120_v11 = vpop.f32.mrf.mxu0 }
  0xe2   :  { %v139_v12 = vadd.f32 %v154_v10, %v120_v11 }
  0xe3   :  { %v182_v13 = vpop.f32.mrf.mxu0 }
  0xe4   :  { %v140_v14 = vmax.f32 %v139_v12, 0.0 }
  0xe5   :  { %v123_v15 = vpop.f32.mrf.mxu0 }
  0xe6   :  { %141 = vst [vmem:[%s252_s3] sm:$0xff] %v140_v14 }
  0xe7   :  { %v183_v16 = vpop.f32.mrf.mxu0 }

// kernel: net_forward.21
= control target key start
LH: loop header
LB: loop body
LE: loop exit
PB: predicated region body
PF: predicated region fallthrough
CT: control target
= control target key end

     0   :  { %v193_v0 = vmov 0.0   ;;  %vm194_vm0 = vmmov 0   ;;  %s248_s1 = inlined_call_operand.vmem [shape: bf16[128,128], index: 1, kind: input, shape index: {}]   ;;  %s249_s0 = inlined_call_operand.vmem [shape: bf16[8,128], index: 0, kind: input, shape index: {}]   ;;  %s250_s2 = inlined_call_operand.vmem [shape: f32[1,128], index: 2, kind: input, shape index: {}]   ;;  %s251_s3 = inlined_call_operand.vmem [shape: f32[8,128], index: 3, kind: output, shape index: {}]  }
   0x1   :  { %163 = vmatprep.subr.bf16.mxu0 %v193_v0  ;;  %v185_v1 = vld [vmem:[%s248_s1 + $0x38] sm:$0xff]   ;;  %179 = vmatprep.mubr.msk.bf16.mxu0 %vm194_vm0, %v193_v0  ;;  %v186_v2 = vld [vmem:[%s248_s1 + $0x30] sm:$0xff]   ;;  %v187_v3 = vld [vmem:[%s248_s1 + $0x28] sm:$0xff]  }
   0x2   :  { %164 = vmatpush3.bf16.msra.mxu0 %v185_v1  ;;  %v188_v4 = vld [vmem:[%s248_s1 + $0x20] sm:$0xff]   ;;  %v189_v5 = vld [vmem:[%s248_s1 + $0x18] sm:$0xff]   ;;  %v190_v6 = vld [vmem:[%s248_s1 + $0x10] sm:$0xff]  }
   0x3   :  { %165 = vmatprep.subr.bf16.mxu0 %v193_v0  ;;  %v191_v7 = vld [vmem:[%s248_s1 + $0x8] sm:$0xff]   ;;  %v192_v8 = vld [vmem:[%s248_s1] sm:$0xff]  }
   0x4   :  { %v21_v9 = vld [vmem:[%s249_s0] sm:$0xf] }
   0x5   :  { %v153_v10 = vld [vmem:[%s250_s2] ss:$0 sm:$0xff] }
   0x6   :  { %166 = vmatpush3.bf16.msra.mxu0 %v186_v2 }
   0x7   :  { %167 = vmatprep.subr.bf16.mxu0 %v193_v0 }
   0xa   :  { %168 = vmatpush3.bf16.msra.mxu0 %v187_v3 }
   0xb   :  { %169 = vmatprep.subr.bf16.mxu0 %v193_v0 }
   0xe   :  { %170 = vmatpush3.bf16.msra.mxu0 %v188_v4 }
   0xf   :  { %171 = vmatprep.subr.bf16.mxu0 %v193_v0 }
  0x12   :  { %172 = vmatpush3.bf16.msra.mxu0 %v189_v5 }
  0x13   :  { %173 = vmatprep.subr.bf16.mxu0 %v193_v0 }
  0x16   :  { %174 = vmatpush3.bf16.msra.mxu0 %v190_v6 }
  0x17   :  { %175 = vmatprep.subr.bf16.mxu0 %v193_v0 }
  0x1a   :  { %176 = vmatpush3.bf16.msra.mxu0 %v191_v7 }
  0x1b   :  { %177 = vmatprep.subr.bf16.mxu0 %v193_v0 }
  0x1e   :  { %178 = vmatpush3.bf16.msra.mxu0 %v192_v8 }
  0x21   :  { %180 = vmatmul.mubr.bf16.vlgmr.msra.gmra.mxu0 %v21_v9 }
  0xe1   :  { %v120_v11 = vpop.f32.mrf.mxu0 }
  0xe2   :  { %v139_v12 = vadd.f32 %v153_v10, %v120_v11 }
  0xe3   :  { %v181_v13 = vpop.f32.mrf.mxu0 }
  0xe4   :  { %140 = vst [vmem:[%s251_s3] sm:$0xff] %v139_v12 }
  0xe5   :  { %v123_v14 = vpop.f32.mrf.mxu0 }
  0xe7   :  { %v182_v15 = vpop.f32.mrf.mxu0 }

</bundles_post_ra>
